<compile_context>
chip_gen: v7x
topology: tpu7x:2x2x1
jax: 0.10.0
libtpu: 0.0.40
codegen_flags: <defaults>
</compile_context>

<pallas_src>
import functools

import jax
import jax.numpy as jnp
from jax.experimental import pallas as pl
from jax.experimental.pallas import tpu as pltpu


def _label_smoothing_kernel(x_ref, t_ref, out_ref, *, confidence, smoothing,
                            inv_c, total_rows, row_tile):
    """One row tile: per-row label-smoothed loss reduced to a tile partial sum."""
    x = x_ref[...].astype(jnp.float32)          # (TN, C)
    t = t_ref[...].astype(jnp.float32)          # (TN, C)

    # Numerically-stable log-softmax pieces without materializing logprobs:
    #   logprobs = (x - m) - lse
    m = jnp.max(x, axis=-1, keepdims=True)                              # (TN,1)
    shifted = x - m                                                     # (TN,C)
    lse = jnp.log(jnp.sum(jnp.exp(shifted), axis=-1, keepdims=True))    # (TN,1)

    sum_t = jnp.sum(t, axis=-1, keepdims=True)                          # (TN,1)
    dot_st = jnp.sum(shifted * t, axis=-1, keepdims=True)               # (TN,1)
    sum_s = jnp.sum(shifted, axis=-1, keepdims=True)                    # (TN,1)

    nll = lse * sum_t - dot_st                   # == sum(-logprobs * t, -1)
    smooth = lse - sum_s * inv_c                 # == -mean(logprobs, -1)
    loss = confidence * nll + smoothing * smooth                        # (TN,1)

    # Mask rows past the true N (the partial last tile reads padded garbage).
    row0 = pl.program_id(0) * row_tile
    rows = row0 + jax.lax.broadcasted_iota(jnp.int32, loss.shape, 0)
    loss = jnp.where(rows < total_rows, loss, 0.0)

    # Lane-dense, unmasked (1,8,128) store of this tile's partial sum.
    out_ref[...] = jnp.full(out_ref.shape, jnp.sum(loss), dtype=jnp.float32)


def _pick_row_tile(n, c, x_dtype, t_dtype,
                   input_vmem_budget_bytes=8 * 1024 * 1024,
                   max_row_tile=1024):
    """Largest row tile whose double-buffered inputs fit the VMEM budget."""
    xi = jnp.dtype(x_dtype).itemsize
    ti = jnp.dtype(t_dtype).itemsize
    # sublane packing requirement: f32 -> 8, bf16 -> 16, int8/fp8 -> 32
    pack = max(32 // min(xi, ti), 8)
    if n <= pack:
        return n                                  # single full-extent block
    bytes_per_row = 2 * c * (xi + ti)             # x + target, double-buffered
    budget_rows = max(input_vmem_budget_bytes // bytes_per_row, pack)
    row_tile = min(max_row_tile, budget_rows, n)
    return max((row_tile // pack) * pack, pack)


def label_smoothing_loss(x, target, smoothing=0.1, row_tile=None):
    """Training-mode LabelSmoothing forward. x, target: [N, C] floats (any dtype)."""
    assert x.shape == target.shape and x.ndim == 2
    n, c = x.shape
    confidence = 1.0 - smoothing
    if row_tile is None:
        row_tile = _pick_row_tile(n, c, x.dtype, target.dtype)
    num_tiles = pl.cdiv(n, row_tile)

    kernel = functools.partial(
        _label_smoothing_kernel,
        confidence=confidence,
        smoothing=smoothing,
        inv_c=1.0 / c,
        total_rows=n,
        row_tile=row_tile,
    )

    partials = pl.pallas_call(
        kernel,
        out_shape=jax.ShapeDtypeStruct((num_tiles, 8, 128), jnp.float32),
        grid_spec=pltpu.PrefetchScalarGridSpec(
            num_scalar_prefetch=0,
            grid=(num_tiles,),
            in_specs=[
                pl.BlockSpec((row_tile, c), lambda i: (i, 0)),
                pl.BlockSpec((row_tile, c), lambda i: (i, 0)),
            ],
            out_specs=pl.BlockSpec((1, 8, 128), lambda i: (i, 0, 0)),
        ),
        compiler_params=pltpu.CompilerParams(
            dimension_semantics=("parallel",),      # no carried state -> megacore OK
            vmem_limit_bytes=48 * 1024 * 1024,      # headroom for big tiles on all gens
        ),
    )(x, target)

    # Tiny cross-tile reduction + mean in plain JAX.
    return jnp.sum(partials[:, 0, 0]) / jnp.float32(n)


def _reference(x, target, smoothing=0.1):
    confidence = 1.0 - smoothing
    logprobs = jax.nn.log_softmax(x.astype(jnp.float32), axis=-1)
    nll = jnp.sum(-logprobs * target.astype(jnp.float32), axis=-1)
    smooth = -jnp.mean(logprobs, axis=-1)
    return jnp.mean(confidence * nll + smoothing * smooth)


if __name__ == "__main__":
    key = jax.random.PRNGKey(0)
    k1, k2 = jax.random.split(key)

    # rows = batch*seq (deliberately NOT a multiple of the row tile to exercise
    # the tail mask), C = class count (lane-dense). Inputs kept in native bf16.
    N, C = 200, 256
    x = jax.random.normal(k1, (N, C), dtype=jnp.float32).astype(jnp.bfloat16)
    labels = jax.random.randint(k2, (N,), 0, C)
    target = jax.nn.one_hot(labels, C, dtype=jnp.bfloat16)   # soft/one-hot targets

    loss = label_smoothing_loss(x, target, smoothing=0.1)
    loss = jax.block_until_ready(loss)

    ref = _reference(x, target, smoothing=0.1)
    assert jnp.allclose(loss, ref, atol=1e-4, rtol=1e-4), (loss, ref)

    print("KERNEL_OK")
</pallas_src>

<mosaic_0001>
module attributes {stable_mosaic.version = 11 : i64} {
  func.func @_label_smoothing_kernel(%arg0: i32, %arg1: memref<192x256xbf16, #tpu.memory_space<vmem>>, %arg2: memref<192x256xbf16, #tpu.memory_space<vmem>>, %arg3: memref<1x8x128xf32, #tpu.memory_space<vmem>>) attributes {dimension_semantics = [#tpu.dimension_semantics<parallel>], iteration_bounds = array<i64: 2>, scalar_prefetch = 0 : i64, scratch_operands = 0 : i64, tpu.core_type = #tpu.core_type<tc>, window_params = [{transform_indices = @transform_0, window_bounds = array<i64: 192, 256>}, {transform_indices = @transform_1, window_bounds = array<i64: 192, 256>}, {transform_indices = @transform_2, window_bounds = array<i64: 1, 8, 128>}]} {
    %c0 = arith.constant 0 : index
    %c0_0 = arith.constant 0 : index
    %0 = vector.load %arg1[%c0, %c0_0] : memref<192x256xbf16, #tpu.memory_space<vmem>>, vector<192x256xbf16>
    %1 = arith.extf %0 : vector<192x256xbf16> to vector<192x256xf32>
    %c0_1 = arith.constant 0 : index
    %c0_2 = arith.constant 0 : index
    %2 = vector.load %arg2[%c0_1, %c0_2] : memref<192x256xbf16, #tpu.memory_space<vmem>>, vector<192x256xbf16>
    %3 = arith.extf %2 : vector<192x256xbf16> to vector<192x256xf32>
    %cst = arith.constant dense<0xFF800000> : vector<192xf32>
    %4 = vector.multi_reduction <maximumf>, %1, %cst [1] : vector<192x256xf32> to vector<192xf32>
    %5 = vector.shape_cast %4 : vector<192xf32> to vector<192x1xf32>
    %6 = vector.broadcast %5 : vector<192x1xf32> to vector<192x256xf32>
    %7 = arith.subf %1, %6 : vector<192x256xf32>
    %8 = math.exp %7 : vector<192x256xf32>
    %cst_3 = arith.constant dense<0.000000e+00> : vector<192xf32>
    %9 = vector.multi_reduction <add>, %8, %cst_3 [1] : vector<192x256xf32> to vector<192xf32>
    %10 = vector.shape_cast %9 : vector<192xf32> to vector<192x1xf32>
    %11 = math.log %10 : vector<192x1xf32>
    %cst_4 = arith.constant dense<0.000000e+00> : vector<192xf32>
    %12 = vector.multi_reduction <add>, %3, %cst_4 [1] : vector<192x256xf32> to vector<192xf32>
    %13 = vector.shape_cast %12 : vector<192xf32> to vector<192x1xf32>
    %14 = arith.mulf %7, %3 : vector<192x256xf32>
    %cst_5 = arith.constant dense<0.000000e+00> : vector<192xf32>
    %15 = vector.multi_reduction <add>, %14, %cst_5 [1] : vector<192x256xf32> to vector<192xf32>
    %16 = vector.shape_cast %15 : vector<192xf32> to vector<192x1xf32>
    %cst_6 = arith.constant dense<0.000000e+00> : vector<192xf32>
    %17 = vector.multi_reduction <add>, %7, %cst_6 [1] : vector<192x256xf32> to vector<192xf32>
    %18 = vector.shape_cast %17 : vector<192xf32> to vector<192x1xf32>
    %19 = arith.mulf %11, %13 : vector<192x1xf32>
    %20 = arith.subf %19, %16 : vector<192x1xf32>
    %cst_7 = arith.constant 3.906250e-03 : f32
    %21 = vector.broadcast %cst_7 : f32 to vector<192x1xf32>
    %22 = arith.mulf %18, %21 : vector<192x1xf32>
    %23 = arith.subf %11, %22 : vector<192x1xf32>
    %cst_8 = arith.constant 0.899999976 : f32
    %24 = vector.broadcast %cst_8 : f32 to vector<192x1xf32>
    %25 = arith.mulf %24, %20 : vector<192x1xf32>
    %cst_9 = arith.constant 1.000000e-01 : f32
    %26 = vector.broadcast %cst_9 : f32 to vector<192x1xf32>
    %27 = arith.mulf %26, %23 : vector<192x1xf32>
    %28 = arith.addf %25, %27 : vector<192x1xf32>
    %c192_i32 = arith.constant 192 : i32
    %29 = arith.muli %arg0, %c192_i32 : i32
    %30 = tpu.iota {dimensions = array<i32: 0>} : vector<192x1xi32>
    %31 = vector.broadcast %29 : i32 to vector<192x1xi32>
    %32 = arith.addi %31, %30 : vector<192x1xi32>
    %c200_i32 = arith.constant 200 : i32
    %33 = vector.broadcast %c200_i32 : i32 to vector<192x1xi32>
    %34 = arith.cmpi slt, %32, %33 : vector<192x1xi32>
    %cst_10 = arith.constant 0.000000e+00 : f32
    %35 = vector.broadcast %cst_10 : f32 to vector<192x1xf32>
    %36 = arith.select %34, %28, %35 : vector<192x1xi1>, vector<192x1xf32>
    %37 = vector.shape_cast %36 : vector<192x1xf32> to vector<1x192x1xf32>
    %cst_11 = arith.constant dense<0.000000e+00> : vector<1xf32>
    %38 = vector.multi_reduction <add>, %37, %cst_11 [1, 2] : vector<1x192x1xf32> to vector<1xf32>
    %39 = vector.shape_cast %38 : vector<1xf32> to vector<1x1x1xf32>
    %40 = vector.extract %39[0, 0, 0] : f32 from vector<1x1x1xf32>
    %41 = vector.broadcast %40 : f32 to vector<1x8x128xf32>
    %c0_12 = arith.constant 0 : index
    %c0_13 = arith.constant 0 : index
    %c0_14 = arith.constant 0 : index
    %42 = vector.load %arg3[%c0_12, %c0_13, %c0_14] : memref<1x8x128xf32, #tpu.memory_space<vmem>>, vector<1x8x128xf32>
    tpu.vector_store %arg3[%c0_12, %c0_13, %c0_14], %41 {strides = array<i32>} : memref<1x8x128xf32, #tpu.memory_space<vmem>>, vector<1x8x128xf32>,
    return
  }
  func.func @transform_0(%arg0: i32) -> (i32, i32) {
    %c0_i32 = arith.constant 0 : i32
    %c0_i32_0 = arith.constant 0 : i32
    return %arg0, %c0_i32 : i32, i32
  }
  func.func @transform_1(%arg0: i32) -> (i32, i32) {
    %c0_i32 = arith.constant 0 : i32
    %c0_i32_0 = arith.constant 0 : i32
    return %arg0, %c0_i32 : i32, i32
  }
  func.func @transform_2(%arg0: i32) -> (i32, i32, i32) {
    %c0_i32 = arith.constant 0 : i32
    %c0_i32_0 = arith.constant 0 : i32
    %c0_i32_1 = arith.constant 0 : i32
    return %arg0, %c0_i32, %c0_i32_0 : i32, i32, i32
  }
}

</mosaic_0001>

<bundles_post_ra>
// kernel: tpu_custom_call.1
= control target key start
LH: loop header
LB: loop body
LE: loop exit
PB: predicated region body
PF: predicated region fallthrough
CT: control target
= control target key end

     0   :  { %7 = vsyncpa [#allocation3], 0  ;;  %s3152_s0 = inlined_call_operand.hbm [shape: bf16[200,256], index: 0, kind: input, shape index: {}]   ;;  %s3153_s1 = inlined_call_operand.hbm [shape: bf16[200,256], index: 1, kind: input, shape index: {}]   ;;  %s3154_s2 = inlined_call_operand.hbm [shape: f32[2,8,128], index: 2, kind: output, shape index: {}]  }
   0x1   :  { %9 = vsyncpa [#allocation3 + $0x1], 0 }
   0x2   :  { %10 = vsyncpa [#allocation6], 0 }
   0x3   :  { %12 = vsyncpa [#allocation6 + $0x1], 0 }
   0x4   :  { %13 = vsyncpa [#allocation4], 0 }
   0x5   :  { %15 = vsyncpa [#allocation4 + $0x1], 0  ;;  %s1782_s9 = smov 0   ;;  %s1784_s10 = smov 0  }
   0x6   :  { %s1786_s11 = smov 0   ;;  %s1788_s12 = smov 0  }
   0x7 LB: > { %s1803_s13 = sadd.s32 4294967295, %s1758_s12   ;;  %s1407_s14 = sadd.s32 4294967294, %s1758_s12   ;;  %s1758_s12 = sphi %s1788_s12, %s3295_s12   ;;  %s1754_s11 = sphi %s1786_s11, %s3294_s11   ;;  %s1750_s10 = sphi %s1784_s10, %s3293_s10   ;;  %s1746_s9 = sphi %s1782_s9, %s3292_s9  }
   0x8   : > { %s1807_s15 = sadd.s32 1, %s1758_s12   ;;  %s28_s16 = sadd.s32 1, %s1754_s11 }
   0x9   : > { %s25_s17 = ssub.s32 %s1758_s12, %s1807_s15  ;;  %p35_p0 = scmp.ne.s32.totalorder %s1754_s11, %s1750_s10 }
   0xa   : > { %p26_p1 = scmp.eq.s32.totalorder %s25_s17, 0  ;;  %p36_p2 = scmp.eq.s32.totalorder %s1758_s12, 0 }
   0xb   : > { %p41_p3 = scmp.ne.s32.totalorder %s1750_s10, %s1746_s9  ;;  %p42_p4 = scmp.eq.s32.totalorder %s1803_s13, 0 }
   0xc   : > { %s1819_s18 = scalar_select %p26_p1, %s1754_s11, %s28_s16  }
   0xd   : > { %p1821_p5 = por %p36_p2, %p35_p0  ;;  %p1825_p6 = por %p42_p4, %p41_p3 }
   0xe   : > { %p91_p7 = scmp.eq.s32.totalorder %s1803_s13, 1  ;;  %p97_p8 = scmp.eq.s32.totalorder %s1407_s14, 1 }
   0xf   : > { %p3155_p11 = scmp.ge.s32.totalorder %s1758_s12, 2 }
  0x10   : > { %p1830_p9 = por %p91_p7, %p35_p0  ;;  %p1834_p10 = por %p97_p8, %p41_p3 }
  0x11   : > { %113 = sbr.rel (%p3155_p11) target bundleno = 94 (0x5e), region = 16 }
  0x12   : > { %s3218_s21 = scalar_select %p1830_p9, 1, 0 }
  0x13   : > { %s3219_s22 = scalar_select %p1834_p10, 1, 0 }
  0x18   : > { %116 = sbr.rel (!%p1821_p5) target bundleno = 59 (0x3b), region = 20  ;;  %s117_s23 = sand.u32 (%p1821_p5), 1, %s1754_s11  }
  0x19   : > { %s122_s24 = smul.u32 (%p1821_p5), 24, %s1758_s12  ;;  %s1848_s29 = scalar_lea.sflag (%p1821_p5), [#allocation3], %s117_s23 }
  0x1a   : > { %s1438_s25 = smul.u32 (%p1821_p5), 192, %s117_s23 }
  0x1b   : > { %s123_s26 = ssub.s32 (%p1821_p5), 25, %s122_s24 }
  0x1c   : > { %p124_p12 = scmp.lt.s32.totalorder (%p1821_p5), %s123_s26, 24  ;;  %s121_s30 = scalar_lea.vmem (%p1821_p5), [#allocation2], %s1438_s25 }
  0x1f   : > { %s3297_s26 = smov (!%p124_p12, %s123_s26), 24 }
  0x20   : > { %s1845_s27 = sshll.u32 %s3297_s26, 7 }
  0x21   : > { %s129_s28 = ssub.s32 3072, %s1845_s27 }
  0x22   : > { %130 = vsyncadd %s1848_s29, %s129_s28  ;;  %p1412_p13 = scmp.ne.s32.totalorder %s1845_s27, 0  ;;  %s1436_s3 = smul.u32 3072, %s1758_s12 }
  0x23   : > { %s136_s4 = sshll.u32 %s121_s30, 4  ;;  %s1636_s17 = scalar_lea.hbm %s3152_s0, 3200  ;;  %s1858_s4 = int_to_ptr.vmem [resolvable:$true] %s136_s4 }
  0x24   : > { %s1856_s7 = scalar_lea.hbm %s3152_s0, %s1436_s3 }
  0x25   : > { %s1632_s8 = scalar_lea.hbm %s1856_s7, %s1845_s27  ;;  %p1637_p3 = scmp.lt.u32.totalorder %s1856_s7, %s3152_s0 }
  0x26   : > { %p1633_p0 = scmp.ne.s32.totalorder %s1856_s7, %s1632_s8  ;;  %p1638_p4 = scmp.lt.u32.totalorder %s1636_s17, %s1632_s8 }
  0x27   : > { %p1640_p8 = scmp.lt.u32.totalorder %s1632_s8, %s1856_s7 }
  0x28   : > { %p1634_p1 = pnand %p1633_p0, %p1412_p13  ;;  %p1639_p7 = por %p1638_p4, %p1637_p3 }
  0x2a   : > { %p1635_p2 = pneg %p1634_p1  ;;  %p1641_p12 = por %p1640_p8, %p1639_p7 }
  0x2c   : > { %p1642_p11 = pnand %p1641_p12, %p1635_p2 }
  0x2e   : > { %1645 = shalt.err (!%p1642_p11)
}
  0x2f   : > { %s1646_s25 = scalar_lea.vmem %s1858_s4, %s1845_s27  ;;  %s1760_s26 = smov [#allocation2]  }
  0x30   : > { %p1647_p0 = scmp.ne.s32.totalorder %s1858_s4, %s1646_s25  ;;  %s1650_s28 = sshll.u32 %s1760_s26, 4  ;;  %s1651_s28 = int_to_ptr.vmem [resolvable:$false] %s1650_s28 }
  0x31   : > { %s1652_s30 = scalar_lea.vmem %s1651_s28, 6144  ;;  %p1653_p9 = scmp.lt.s32.totalorder %s1858_s4, %s1651_s28 }
  0x32   : > { %p1648_p1 = pnand %p1647_p0, %p1412_p13  ;;  %p1654_p3 = scmp.lt.s32.totalorder %s1652_s30, %s1646_s25 }
  0x34   : > { %p1649_p10 = pneg %p1648_p1  ;;  %p1655_p4 = por %p1654_p3, %p1653_p9 }
  0x36   : > { %p1656_p7 = pnand %p1655_p4, %p1649_p10 }
  0x38   : > { %1659 = shalt.err (!%p1656_p7)
}
  0x39   : > { %s1761_s3 = smov 128   ;;  %s1762_s5 = smov 8  }
  0x3a   : > { %142 = dma.hbm_to_vmem [thread:$0]  (%p1412_p13), %s1856_s7, %s1845_s27, %s1858_s4, %s1848_s29, %s1761_s3, %s1761_s3, %s1762_s5  }
  0x3b PF: > { %145 = sbr.rel (!%p1821_p5) target bundleno = 94 (0x5e), region = 24  ;;  %s146_s6 = sand.u32 (%p1821_p5), 1, %s1754_s11  }
  0x3c   : > { %s151_s8 = smul.u32 (%p1821_p5), 24, %s1758_s12  ;;  %s1892_s24 = scalar_lea.sflag (%p1821_p5), [#allocation6], %s146_s6 }
  0x3d   : > { %s1439_s14 = smul.u32 (%p1821_p5), 192, %s146_s6 }
  0x3e   : > { %s152_s16 = ssub.s32 (%p1821_p5), 25, %s151_s8 }
  0x3f   : > { %p153_p9 = scmp.lt.s32.totalorder (%p1821_p5), %s152_s16, 24  ;;  %s150_s27 = scalar_lea.vmem (%p1821_p5), [#allocation5], %s1439_s14 }
  0x42   : > { %s3299_s16 = smov (!%p153_p9, %s152_s16), 24 }
  0x43   : > { %s1889_s17 = sshll.u32 %s3299_s16, 7 }
  0x44   : > { %s158_s23 = ssub.s32 3072, %s1889_s17 }
  0x45   : > { %159 = vsyncadd %s1892_s24, %s158_s23  ;;  %p1419_p5 = scmp.ne.s32.totalorder %s1889_s17, 0  ;;  %s1437_s19 = smul.u32 3072, %s1758_s12 }
  0x46   : > { %s165_s29 = sshll.u32 %s150_s27, 4  ;;  %s1664_s3 = scalar_lea.hbm %s3153_s1, 3200  ;;  %s1902_s29 = int_to_ptr.vmem [resolvable:$true] %s165_s29 }
  0x47   : > { %s1900_s25 = scalar_lea.hbm %s3153_s1, %s1437_s19 }
  0x48   : > { %s1660_s26 = scalar_lea.hbm %s1900_s25, %s1889_s17  ;;  %p1665_p2 = scmp.lt.u32.totalorder %s1900_s25, %s3153_s1 }
  0x49   : > { %p1661_p10 = scmp.ne.s32.totalorder %s1900_s25, %s1660_s26  ;;  %p1666_p8 = scmp.lt.u32.totalorder %s1664_s3, %s1660_s26 }
  0x4a   : > { %p1668_p0 = scmp.lt.u32.totalorder %s1660_s26, %s1900_s25 }
  0x4b   : > { %p1662_p11 = pnand %p1661_p10, %p1419_p5  ;;  %p1667_p12 = por %p1666_p8, %p1665_p2 }
  0x4d   : > { %p1663_p13 = pneg %p1662_p11  ;;  %p1669_p1 = por %p1668_p0, %p1667_p12 }
  0x4f   : > { %p1670_p3 = pnand %p1669_p1, %p1663_p13 }
  0x51   : > { %1673 = shalt.err (!%p1670_p3)
}
  0x52   : > { %s1674_s8 = scalar_lea.vmem %s1902_s29, %s1889_s17  ;;  %s1763_s14 = smov [#allocation5]  }
  0x53   : > { %p1675_p4 = scmp.ne.s32.totalorder %s1902_s29, %s1674_s8  ;;  %s1678_s16 = sshll.u32 %s1763_s14, 4  ;;  %s1679_s16 = int_to_ptr.vmem [resolvable:$false] %s1678_s16 }
  0x54   : > { %s1680_s23 = scalar_lea.vmem %s1679_s16, 6144  ;;  %p1681_p10 = scmp.lt.s32.totalorder %s1902_s29, %s1679_s16 }
  0x55   : > { %p1676_p7 = pnand %p1675_p4, %p1419_p5  ;;  %p1682_p11 = scmp.lt.s32.totalorder %s1680_s23, %s1674_s8 }
  0x57   : > { %p1677_p9 = pneg %p1676_p7  ;;  %p1683_p2 = por %p1682_p11, %p1681_p10 }
  0x59   : > { %p1684_p8 = pnand %p1683_p2, %p1677_p9 }
  0x5b   : > { %1687 = shalt.err (!%p1684_p8)
}
  0x5c   : > { %s1764_s27 = smov 128   ;;  %s1765_s19 = smov 8  }
  0x5d   : > { %171 = dma.hbm_to_vmem [thread:$0]  (%p1419_p5), %s1900_s25, %s1889_s17, %s1902_s29, %s1892_s24, %s1764_s27, %s1764_s27, %s1765_s19  }
  0x5e PF: > { %p1424_p13 = scmp.ge.s32.totalorder %s1758_s12, 1  ;;  %p173_p12 = scmp.lt.s32.totalorder %s1758_s12, 3 }
  0x60   : > { %p174_p0 = pnand %p1424_p13, %p173_p12 }
  0x62   : > { %177 = sbr.rel (%p174_p0) target bundleno = 819 (0x333), region = 28 }
  0x69   : > { %s1932_s4 = sand.u32 1, %s1750_s10  }
  0x6a   : > { %s1440_s7 = smul.u32 192, %s1932_s4  ;;  %s180_s26 = scalar_lea.sflag [#allocation3], %s1932_s4 }
  0x6c   : > { %s1936_s28 = scalar_lea.vmem [#allocation2], %s1440_s7 }
  0x6d   : > { %1733 = dma.done.wait (%p1825_p6), %s180_s26, 3072  }
  0x6e   : > { %1735 = vsyncadd (%p1825_p6), %s180_s26, 4294964224  ;;  %s189_s17 = scalar_lea.sflag [#allocation6], %s1932_s4  ;;  %s1943_s24 = scalar_lea.vmem [#allocation5], %s1440_s7 }
  0x6f   : > { %1737 = dma.done.wait (%p1825_p6), %s189_s17, 3072  }
  0x70   : > { %1739 = vsyncadd (%p1825_p6), %s189_s17, 4294964224  ;;  %v1950_v0 = vld [vmem:[%s1936_s28] sm:$0xff]  ;;  %v1953_v1 = vld [vmem:[%s1936_s28 + $0x10] sm:$0xff]  ;;  %s1142_s20 = smul.u32 192, %s1803_s13  ;;  %vm1241_vm2 = vcmask 7168   ;;  %s1425_s29 = sshll.u32 %s1932_s4, 3 }
  0x71   : > { %v1956_v2 = vld [vmem:[%s1936_s28 + $0x8] sm:$0xff]  ;;  %v254_v3 = vunpack.c.l.bf16 %v1950_v0  ;;  %v255_v4 = vunpack.c.h.bf16 %v1950_v0  ;;  %v258_v5 = vunpack.c.l.bf16 %v1953_v1  ;;  %v259_v6 = vunpack.c.h.bf16 %v1953_v1  ;;  %v1963_v7 = vld [vmem:[%s1936_s28 + $0x18] sm:$0xff]  ;;  %v1966_v8 = vld [vmem:[%s1936_s28 + $0x20] sm:$0xff]  ;;  %s217_s25 = scalar_lea.vmem [#allocation7], %s1425_s29  ;;  %s1427_s3 = sshll.u32 %s1803_s13, 7 }
  0x72   : > { %v256_v9 = vunpack.c.l.bf16 %v1956_v2  ;;  %v257_v10 = vunpack.c.h.bf16 %v1956_v2  ;;  %v260_v11 = vunpack.c.l.bf16 %v1963_v7  ;;  %v261_v12 = vunpack.c.h.bf16 %v1963_v7  ;;  %v1973_v13 = vld [vmem:[%s1936_s28 + $0x28] sm:$0xff]  ;;  %v1996_v22 = vld [vmem:[%s1936_s28 + $0x30] sm:$0xff]  ;;  %v1999_v23 = vld [vmem:[%s1936_s28 + $0x38] sm:$0xff]  ;;  %s1314_s30 = sshll.u32 %s217_s25, 4  ;;  %s3110_s14 = scalar_lea.hbm %s3154_s2, %s1427_s3  ;;  %s3105_s30 = int_to_ptr.vmem [resolvable:$true] %s1314_s30 }
  0x73   : > { %v374_v14 = vmax.f32 %v254_v3, %v255_v4  ;;  %v380_v15 = vmax.f32 %v258_v5, %v259_v6  ;;  %v262_v16 = vunpack.c.l.bf16 %v1966_v8  ;;  %v263_v17 = vunpack.c.h.bf16 %v1966_v8  ;;  %v2014_v30 = vld [vmem:[%s1936_s28 + $0x40] sm:$0xff]  ;;  %v2017_v31 = vld [vmem:[%s1936_s28 + $0x48] sm:$0xff]  ;;  %v2032_v38 = vld [vmem:[%s1936_s28 + $0x50] sm:$0xff]  ;;  %s1301_s16 = scalar_lea.sflag [#allocation4], %s1932_s4  ;;  %s1688_s23 = scalar_lea.vmem %s3105_s30, 128 }
  0x74   : > { %v377_v18 = vmax.f32 %v256_v9, %v257_v10  ;;  %v383_v19 = vmax.f32 %v260_v11, %v261_v12  ;;  %v264_v20 = vunpack.c.l.bf16 %v1973_v13  ;;  %v265_v21 = vunpack.c.h.bf16 %v1973_v13  ;;  %v2035_v39 = vld [vmem:[%s1936_s28 + $0x58] sm:$0xff]  ;;  %v2050_v46 = vld [vmem:[%s1936_s28 + $0x60] sm:$0xff]  ;;  %v2053_v47 = vld [vmem:[%s1936_s28 + $0x68] sm:$0xff]  ;;  %p1689_p6 = scmp.ne.s32.totalorder %s3105_s30, %s1688_s23  ;;  %p3289_p5 = scmp.ne.s32.totalorder %s3218_s21, 0 }
  0x75   : > { %375 = vmax.xlane.f32.xlu0 %v374_v14  ;;  %381 = vmax.xlane.f32.xlu1 %v380_v15  ;;  %v386_v24 = vmax.f32 %v262_v16, %v263_v17  ;;  %v3206_v25 = vunpack.c.l.bf16 %v1996_v22  ;;  %v3203_v27 = vunpack.c.h.bf16 %v1996_v22  ;;  %v3194_v28 = vunpack.c.l.bf16 %v1999_v23  ;;  %v2068_v54 = vld [vmem:[%s1936_s28 + $0x70] sm:$0xff]  ;;  %v2071_v55 = vld [vmem:[%s1936_s28 + $0x78] sm:$0xff]  ;;  %v2084_v60 = vld [vmem:[%s1936_s28 + $0x80] sm:$0xff]  ;;  %s1766_s13 = smov [#allocation7]  }
  0x76   : > { %v389_v26 = vmax.f32 %v264_v20, %v265_v21  ;;  %v3191_v29 = vunpack.c.h.bf16 %v1999_v23  ;;  %v3190_v32 = vunpack.c.l.bf16 %v2014_v30  ;;  %v3189_v33 = vunpack.c.h.bf16 %v2014_v30  ;;  %v2089_v63 = vld [vmem:[%s1936_s28 + $0x88] sm:$0xff]  ;;  %p1690_p1 = pnand %p1689_p6, %p3289_p5  ;;  %s1692_s27 = sshll.u32 %s1766_s13, 4  ;;  %s1693_s27 = int_to_ptr.vmem [resolvable:$false] %s1692_s27 }
  0x77   : > { %v392_v34 = vmax.f32 %v3206_v25, %v3203_v27  ;;  %v3188_v36 = vunpack.c.l.bf16 %v2017_v31  ;;  %v3187_v37 = vunpack.c.h.bf16 %v2017_v31  ;;  %v3186_v41 = vunpack.c.l.bf16 %v2032_v38  ;;  %v2270_v27 = vld [vmem:[%s1943_s24 + $0x60] sm:$0xff]  ;;  %v2279_v25 = vld [vmem:[%s1943_s24 + $0x68] sm:$0xff]  ;;  %s1694_s19 = scalar_lea.vmem %s1693_s27, 256  ;;  %p1695_p4 = scmp.lt.s32.totalorder %s3105_s30, %s1693_s27 }
  0x78   : > { %v395_v35 = vmax.f32 %v3194_v28, %v3191_v29  ;;  %v398_v40 = vmax.f32 %v3190_v32, %v3189_v33  ;;  %v3185_v43 = vunpack.c.h.bf16 %v2032_v38  ;;  %v3184_v44 = vunpack.c.l.bf16 %v2035_v39  ;;  %v2225_v33 = vld [vmem:[%s1943_s24 + $0x38] sm:$0xff]  ;;  %v2234_v29 = vld [vmem:[%s1943_s24 + $0x40] sm:$0xff]  ;;  %v2243_v28 = vld [vmem:[%s1943_s24 + $0x48] sm:$0xff]  ;;  %p1691_p3 = pneg %p1690_p1  ;;  %p1696_p7 = scmp.lt.s32.totalorder %s1694_s19, %s1688_s23 }
  0x79   : > { %378 = vmax.xlane.f32.xlu0 %v377_v18  ;;  %384 = vmax.xlane.f32.xlu1 %v383_v19  ;;  %v401_v42 = vmax.f32 %v3188_v36, %v3187_v37  ;;  %v3181_v45 = vunpack.c.h.bf16 %v2035_v39  ;;  %v3176_v48 = vunpack.c.l.bf16 %v2050_v46  ;;  %v3171_v49 = vunpack.c.h.bf16 %v2050_v46 }
  0x7a   : > { %v404_v50 = vmax.f32 %v3186_v41, %v3185_v43  ;;  %v3170_v52 = vunpack.c.l.bf16 %v2053_v47  ;;  %v3169_v53 = vunpack.c.h.bf16 %v2053_v47  ;;  %v3164_v57 = vunpack.c.l.bf16 %v2068_v54  ;;  %p1697_p9 = por %p1696_p7, %p1695_p4 }
  0x7b   : > { %v407_v51 = vmax.f32 %v3184_v44, %v3181_v45  ;;  %v410_v56 = vmax.f32 %v3176_v48, %v3171_v49  ;;  %v3163_v59 = vunpack.c.h.bf16 %v2068_v54  ;;  %v3158_v61 = vunpack.c.l.bf16 %v2071_v55  ;;  %v2179_v48 = vld [vmem:[%s1943_s24 + $0x10] sm:$0xff]  ;;  %v2194_v45 = vld [vmem:[%s1943_s24 + $0x20] sm:$0xff]  ;;  %v2207_v44 = vld [vmem:[%s1943_s24 + $0x28] sm:$0xff] }
  0x7c   : > { %v413_v58 = vmax.f32 %v3170_v52, %v3169_v53  ;;  %v3157_v62 = vunpack.c.h.bf16 %v2071_v55  ;;  %v3162_v14 = vunpack.c.l.bf16 %v2084_v60  ;;  %v3159_v15 = vunpack.c.h.bf16 %v2084_v60  ;;  %v2161_v52 = vld [vmem:[%s1943_s24 + $0x8] sm:$0xff]  ;;  %p1698_p10 = pnand %p1697_p9, %p1691_p3 }
  0x7d   : > { %387 = vmax.xlane.f32.xlu0 %v386_v24  ;;  %390 = vmax.xlane.f32.xlu1 %v389_v26  ;;  %v416_v18 = vmax.f32 %v3164_v57, %v3163_v59  ;;  %v2102_v24 = vld [vmem:[%s1936_s28 + $0x90] sm:$0xff]  ;;  %v3161_v26 = vunpack.c.l.bf16 %v2089_v63  ;;  %v3193_v43 = vunpack.c.l.bf16 %v2207_v44  ;;  %v3192_v41 = vunpack.c.h.bf16 %v2207_v44 }
  0x7e   : > { %v419_v19 = vmax.f32 %v3158_v61, %v3157_v62  ;;  %v3198_v32 = vunpack.c.h.bf16 %v2225_v33 }
  0x7f   : > { %v725_v37 = vadd.f32 %v3192_v41, %v3193_v43  ;;  %v3201_v43 = vunpack.c.h.bf16 %v2234_v29 }
  0x81   : > { %393 = vmax.xlane.f32.xlu0 %v392_v34  ;;  %396 = vmax.xlane.f32.xlu1 %v395_v35  ;;  %v3160_v34 = vunpack.c.h.bf16 %v2089_v63  ;;  %v2107_v35 = vld [vmem:[%s1936_s28 + $0x98] sm:$0xff] }
  0x82   : > { %v3167_v62 = vunpack.c.h.bf16 %v2107_v35 }
  0x85   : > { %399 = vmax.xlane.f32.xlu0 %v398_v40  ;;  %402 = vmax.xlane.f32.xlu1 %v401_v42  ;;  %v3166_v40 = vunpack.c.l.bf16 %v2102_v24  ;;  %v3165_v42 = vunpack.c.h.bf16 %v2102_v24 }
  0x89   : > { %405 = vmax.xlane.f32.xlu0 %v404_v50  ;;  %408 = vmax.xlane.f32.xlu1 %v407_v51  ;;  %v422_v50 = vmax.f32 %v3162_v14, %v3159_v15  ;;  %v2116_v51 = vld [vmem:[%s1936_s28 + $0xa0] sm:$0xff] }
  0x8a   : > { %v3175_v61 = vunpack.c.l.bf16 %v2116_v51  ;;  %v3172_v15 = vunpack.c.h.bf16 %v2116_v51 }
  0x8d   : > { %411 = vmax.xlane.f32.xlu0 %v410_v56  ;;  %414 = vmax.xlane.f32.xlu1 %v413_v58  ;;  %v425_v56 = vmax.f32 %v3161_v26, %v3160_v34  ;;  %v3168_v58 = vunpack.c.l.bf16 %v2107_v35  ;;  %v2134_v34 = vld [vmem:[%s1936_s28 + $0xb0] sm:$0xff] }
  0x8e   : > { %v3180_v57 = vunpack.c.l.bf16 %v2134_v34 }
  0x8f   : > { %v431_v26 = vmax.f32 %v3168_v58, %v3167_v62 }
  0x91   : > { %417 = vmax.xlane.f32.xlu0 %v416_v18  ;;  %420 = vmax.xlane.f32.xlu1 %v419_v19  ;;  %v2125_v18 = vld [vmem:[%s1936_s28 + $0xa8] sm:$0xff]  ;;  %v428_v19 = vmax.f32 %v3166_v40, %v3165_v42  ;;  %v3177_v42 = vunpack.c.h.bf16 %v2134_v34  ;;  %v2152_v40 = vld [vmem:[%s1943_s24] sm:$0xff] }
  0x92   : > { %v3174_v14 = vunpack.c.l.bf16 %v2125_v18  ;;  %v3173_v59 = vunpack.c.h.bf16 %v2125_v18  ;;  %v3182_v49 = vunpack.c.h.bf16 %v2152_v40 }
  0x94   : > { %v437_v62 = vmax.f32 %v3174_v14, %v3173_v59  ;;  %v328_v14 = vunpack.c.l.bf16 %v2161_v52 }
  0x95   : > { %423 = vmax.xlane.f32.xlu0 %v422_v50  ;;  %426 = vmax.xlane.f32.xlu1 %v425_v56  ;;  %v2143_v50 = vld [vmem:[%s1936_s28 + $0xb8] sm:$0xff]  ;;  %v434_v56 = vmax.f32 %v3175_v61, %v3172_v15  ;;  %v329_v61 = vunpack.c.h.bf16 %v2161_v52 }
  0x96   : > { %v3179_v58 = vunpack.c.l.bf16 %v2143_v50  ;;  %v3178_v53 = vunpack.c.h.bf16 %v2143_v50  ;;  %v2170_v15 = vld [vmem:[%s1943_s24 + $0x18] sm:$0xff] }
  0x98   : > { %v443_v59 = vmax.f32 %v3179_v58, %v3178_v53  ;;  %v713_v53 = vadd.f32 %v329_v61, %v328_v14  ;;  %v330_v58 = vunpack.c.l.bf16 %v2179_v48 }
  0x99   : > { %429 = vmax.xlane.f32.xlu0 %v428_v19  ;;  %432 = vmax.xlane.f32.xlu1 %v431_v26  ;;  %v3183_v19 = vunpack.c.l.bf16 %v2152_v40  ;;  %v440_v26 = vmax.f32 %v3180_v57, %v3177_v42  ;;  %v332_v42 = vunpack.c.l.bf16 %v2170_v15  ;;  %v331_v57 = vunpack.c.h.bf16 %v2179_v48 }
  0x9d   : > { %435 = vmax.xlane.f32.xlu0 %v434_v56  ;;  %438 = vmax.xlane.f32.xlu1 %v437_v62  ;;  %v710_v56 = vadd.f32 %v3182_v49, %v3183_v19  ;;  %v3211_v62 = vunpack.c.h.bf16 %v2170_v15  ;;  %v3197_v49 = vunpack.c.h.bf16 %v2194_v45  ;;  %v716_v19 = vadd.f32 %v331_v57, %v330_v58 }
  0xa1   : > { %441 = vmax.xlane.f32.xlu0 %v440_v26  ;;  %444 = vmax.xlane.f32.xlu1 %v443_v59  ;;  %v719_v26 = vadd.f32 %v3211_v62, %v332_v42  ;;  %v3200_v59 = vunpack.c.l.bf16 %v2194_v45 }
  0xa5   : > { %711 = vadd.xlane.f32.xlu0 %v710_v56  ;;  %714 = vadd.xlane.f32.xlu1 %v713_v53  ;;  %v722_v56 = vadd.f32 %v3197_v49, %v3200_v59  ;;  %v2216_v53 = vld [vmem:[%s1943_s24 + $0x30] sm:$0xff]  ;;  %v2261_v59 = vld [vmem:[%s1943_s24 + $0x58] sm:$0xff] }
  0xa6   : > { %v3195_v36 = vunpack.c.h.bf16 %v2216_v53  ;;  %v2252_v49 = vld [vmem:[%s1943_s24 + $0x50] sm:$0xff] }
  0xa9   : > { %720 = vadd.xlane.f32.xlu0 %v719_v26  ;;  %717 = vadd.xlane.f32.xlu1 %v716_v19  ;;  %v3196_v26 = vunpack.c.l.bf16 %v2216_v53 }
  0xab   : > { %v728_v19 = vadd.f32 %v3195_v36, %v3196_v26  ;;  %v3204_v26 = vunpack.c.h.bf16 %v2243_v28 }
  0xad   : > { %723 = vadd.xlane.f32.xlu0 %v722_v56  ;;  %v3199_v56 = vunpack.c.l.bf16 %v2225_v33 }
  0xaf   : > { %v731_v41 = vadd.f32 %v3198_v32, %v3199_v56  ;;  %v3207_v56 = vunpack.c.h.bf16 %v2252_v49 }
  0xb1   : > { %726 = vadd.xlane.f32.xlu0 %v725_v37  ;;  %v3202_v37 = vunpack.c.l.bf16 %v2234_v29 }
  0xb3   : > { %v734_v36 = vadd.f32 %v3201_v43, %v3202_v37  ;;  %v3210_v37 = vunpack.c.l.bf16 %v2261_v59 }
  0xb5   : > { %729 = vadd.xlane.f32.xlu0 %v728_v19  ;;  %v3205_v19 = vunpack.c.l.bf16 %v2243_v28 }
  0xb7   : > { %v737_v32 = vadd.f32 %v3204_v26, %v3205_v19  ;;  %v3213_v19 = vunpack.c.l.bf16 %v2270_v27 }
  0xb9   : > { %732 = vadd.xlane.f32.xlu0 %v731_v41  ;;  %v3208_v41 = vunpack.c.l.bf16 %v2252_v49 }
  0xbb   : > { %v740_v43 = vadd.f32 %v3207_v56, %v3208_v41  ;;  %v3215_v41 = vunpack.c.l.bf16 %v2279_v25 }
  0xbd   : > { %735 = vadd.xlane.f32.xlu0 %v734_v36  ;;  %v3209_v36 = vunpack.c.h.bf16 %v2261_v59 }
  0xbf   : > { %v743_v26 = vadd.f32 %v3209_v36, %v3210_v37 }
  0xc1   : > { %738 = vadd.xlane.f32.xlu0 %v737_v32  ;;  %v3212_v32 = vunpack.c.h.bf16 %v2270_v27 }
  0xc3   : > { %v746_v56 = vadd.f32 %v3212_v32, %v3213_v19 }
  0xc5   : > { %741 = vadd.xlane.f32.xlu0 %v740_v43  ;;  %v3214_v43 = vunpack.c.h.bf16 %v2279_v25 }
  0xc7   : > { %v749_v36 = vadd.f32 %v3214_v43, %v3215_v41 }
  0xc9   : > { %744 = vadd.xlane.f32.xlu0 %v743_v26 }
  0xcd   : > { %747 = vadd.xlane.f32.xlu0 %v746_v56 }
  0xd1   : > { %750 = vadd.xlane.f32.xlu0 %v749_v36 }
 0x102   : > { %v376_v37 = vpop.xlane.xlu0 %375  ;;  %v382_v62 = vpop.xlane.xlu1 %381 }
 0x103   : > { %v2293_v26 = vsub.f32 %v254_v3, %v376_v37  ;;  %v2297_v32 = vsub.f32 %v255_v4, %v376_v37  ;;  %v2301_v19 = vsub.f32 %v258_v5, %v382_v62  ;;  %v2305_v56 = vsub.f32 %v259_v6, %v382_v62 }
 0x105   : > { %v902_v36 = vadd.f32 %v2297_v32, %v2293_v26  ;;  %v908_v1 = vadd.f32 %v2305_v56, %v2301_v19  ;;  %v787_v8 = vmul.f32 %v2305_v56, %v331_v57  ;;  %v3220_v57 = vunpack.c.h.bf16 %v2170_v15 }
 0x106   : > { %v379_v43 = vpop.xlane.xlu0 %378  ;;  %v385_v41 = vpop.xlane.xlu1 %384 }
 0x107   : > { %v2311_v3 = vsub.f32 %v256_v9, %v379_v43  ;;  %v2315_v0 = vsub.f32 %v257_v10, %v379_v43  ;;  %903 = vadd.xlane.f32.xlu0 %v902_v36  ;;  %v2319_v4 = vsub.f32 %v260_v11, %v385_v41  ;;  %v2325_v5 = vsub.f32 %v261_v12, %v385_v41 }
 0x109   : > { %v905_v6 = vadd.f32 %v2315_v0, %v2311_v3  ;;  %v911_v11 = vadd.f32 %v2325_v5, %v2319_v4  ;;  %v784_v7 = vmul.f32 %v2311_v3, %v328_v14  ;;  %v785_v12 = vmul.f32 %v2315_v0, %v329_v61 }
 0x10a   : > { %v388_v9 = vpop.xlane.xlu0 %387  ;;  %v391_v62 = vpop.xlane.xlu1 %390  ;;  %v788_v48 = vmul.f32 %v2319_v4, %v332_v42  ;;  %v789_v41 = vmul.f32 %v2325_v5, %v3220_v57  ;;  %v3223_v42 = vunpack.c.l.bf16 %v2194_v45  ;;  %v3230_v57 = vunpack.c.h.bf16 %v2014_v30 }
 0x10b   : > { %909 = vadd.xlane.f32.xlu0 %v908_v1  ;;  %v2331_v2 = vsub.f32 %v262_v16, %v388_v9  ;;  %v2335_v10 = vsub.f32 %v263_v17, %v388_v9  ;;  %906 = vadd.xlane.f32.xlu1 %v905_v6  ;;  %v786_v16 = vmul.f32 %v2301_v19, %v330_v58  ;;  %v3224_v9 = vunpack.c.h.bf16 %v2194_v45 }
 0x10c   : > { %v833_v17 = vadd.f32 %v785_v12, %v784_v7  ;;  %v2353_v37 = vsub.f32 %v264_v20, %v391_v62  ;;  %v2357_v52 = vsub.f32 %v265_v21, %v391_v62  ;;  %v3221_v20 = vunpack.c.l.bf16 %v1996_v22 }
 0x10d   : > { %v914_v61 = vadd.f32 %v2335_v10, %v2331_v2  ;;  %v836_v14 = vadd.f32 %v787_v8, %v786_v16  ;;  %v3222_v21 = vunpack.c.h.bf16 %v1996_v22  ;;  %v839_v1 = vadd.f32 %v789_v41, %v788_v48 }
 0x10e   : > { %v394_v58 = vpop.xlane.xlu0 %393  ;;  %v917_v36 = vadd.f32 %v2357_v52, %v2353_v37  ;;  %v397_v6 = vpop.xlane.xlu1 %396  ;;  %v790_v15 = vmul.f32 %v2331_v2, %v3223_v42  ;;  %v3225_v7 = vunpack.c.l.bf16 %v1999_v23  ;;  %v3226_v12 = vunpack.c.h.bf16 %v1999_v23 }
 0x10f   : > { %912 = vadd.xlane.f32.xlu0 %v911_v11  ;;  %834 = vadd.xlane.f32.xlu1 %v833_v17  ;;  %v2369_v13 = vsub.f32 %v3221_v20, %v394_v58  ;;  %v2373_v43 = vsub.f32 %v3222_v21, %v394_v58  ;;  %v791_v11 = vmul.f32 %v2335_v10, %v3224_v9  ;;  %v3229_v48 = vunpack.c.l.bf16 %v2014_v30 }
 0x110   : > { %v2385_v22 = vsub.f32 %v3225_v7, %v397_v6  ;;  %v2389_v62 = vsub.f32 %v3226_v12, %v397_v6  ;;  %v3232_v6 = vunpack.c.h.bf16 %v2216_v53  ;;  %v3234_v9 = vunpack.c.h.bf16 %v2017_v31 }
 0x111   : > { %v920_v16 = vadd.f32 %v2373_v43, %v2369_v13  ;;  %v842_v8 = vadd.f32 %v791_v11, %v790_v15  ;;  %v3233_v15 = vunpack.c.l.bf16 %v2017_v31 }
 0x112   : > { %v400_v17 = vpop.xlane.xlu0 %399  ;;  %v923_v20 = vadd.f32 %v2389_v62, %v2385_v22  ;;  %v795_v42 = vmul.f32 %v2373_v43, %v3232_v6  ;;  %v3241_v6 = vunpack.c.l.bf16 %v2035_v39 }
 0x113   : > { %915 = vadd.xlane.f32.xlu0 %v914_v61  ;;  %837 = vadd.xlane.f32.xlu1 %v836_v14  ;;  %v3227_v61 = vunpack.c.l.bf16 %v2207_v44  ;;  %v3228_v14 = vunpack.c.h.bf16 %v2207_v44  ;;  %v2401_v23 = vsub.f32 %v3229_v48, %v400_v17  ;;  %v2405_v41 = vsub.f32 %v3230_v57, %v400_v17 }
 0x114   : > { %v3236_v17 = vunpack.c.h.bf16 %v2225_v33 }
 0x115   : > { %v792_v45 = vmul.f32 %v2353_v37, %v3227_v61  ;;  %v793_v58 = vmul.f32 %v2357_v52, %v3228_v14  ;;  %v926_v7 = vadd.f32 %v2405_v41, %v2401_v23  ;;  %v3238_v14 = vunpack.c.h.bf16 %v2032_v38 }
 0x116   : > { %v797_v61 = vmul.f32 %v2389_v62, %v3236_v17 }
 0x117   : > { %918 = vadd.xlane.f32.xlu0 %v917_v36  ;;  %840 = vadd.xlane.f32.xlu1 %v839_v1  ;;  %v845_v21 = vadd.f32 %v793_v58, %v792_v45  ;;  %v403_v36 = vpop.xlane.xlu1 %402  ;;  %v3231_v1 = vunpack.c.l.bf16 %v2216_v53  ;;  %v3237_v45 = vunpack.c.l.bf16 %v2032_v38  ;;  %v496_v38 = vmul.f32 1.442695, %v2297_v32 }
 0x118   : > { %v2417_v30 = vsub.f32 %v3233_v15, %v403_v36  ;;  %v2421_v11 = vsub.f32 %v3234_v9, %v403_v36  ;;  %v3240_v36 = vunpack.c.h.bf16 %v2234_v29  ;;  %v3242_v15 = vunpack.c.h.bf16 %v2035_v39 }
 0x119   : > { %v794_v44 = vmul.f32 %v2369_v13, %v3231_v1  ;;  %v504_v39 = vmul.f32 1.442695, %v2305_v56  ;;  %v3247_v56 = vunpack.c.l.bf16 %v2252_v49 }
 0x11a   : > { %v929_v48 = vadd.f32 %v2421_v11, %v2417_v30  ;;  %v799_v1 = vmul.f32 %v2405_v41, %v3240_v36  ;;  %v3248_v36 = vunpack.c.h.bf16 %v2252_v49 }
 0x11b   : > { %921 = vadd.xlane.f32.xlu0 %v920_v16  ;;  %843 = vadd.xlane.f32.xlu1 %v842_v8  ;;  %v848_v12 = vadd.f32 %v795_v42, %v794_v44  ;;  %v406_v16 = vpop.xlane.xlu0 %405  ;;  %v3235_v8 = vunpack.c.l.bf16 %v2225_v33  ;;  %v494_v44 = vmul.f32 1.442695, %v2293_v26 }
 0x11c   : > { %v2433_v31 = vsub.f32 %v3237_v45, %v406_v16  ;;  %v2437_v58 = vsub.f32 %v3238_v14, %v406_v16  ;;  %v3243_v16 = vunpack.c.l.bf16 %v2243_v28  ;;  %v3245_v45 = vunpack.c.l.bf16 %v2050_v46 }
 0x11d   : > { %v796_v53 = vmul.f32 %v2385_v22, %v3235_v8  ;;  %1488 = vpow2.f32 %v494_v44  ;;  %v506_v44 = vmul.f32 1.442695, %v2319_v4  ;;  %v3251_v4 = vunpack.c.l.bf16 %v2261_v59 }
 0x11e   : > { %v800_v8 = vmul.f32 %v2417_v30, %v3243_v16  ;;  %1490 = vpow2.f32 %v496_v38 }
 0x11f   : > { %924 = vadd.xlane.f32.xlu0 %v923_v20  ;;  %846 = vadd.xlane.f32.xlu1 %v845_v21  ;;  %v851_v57 = vadd.f32 %v797_v61, %v796_v53  ;;  %v409_v20 = vpop.xlane.xlu1 %408  ;;  %v3239_v21 = vunpack.c.l.bf16 %v2234_v29  ;;  %v3244_v53 = vunpack.c.h.bf16 %v2243_v28  ;;  %v502_v61 = vmul.f32 1.442695, %v2301_v19 }
 0x120   : > { %v2451_v42 = vsub.f32 %v3241_v6, %v409_v20  ;;  %v2455_v9 = vsub.f32 %v3242_v15, %v409_v20  ;;  %v498_v20 = vmul.f32 1.442695, %v2311_v3  ;;  %v508_v3 = vmul.f32 1.442695, %v2325_v5 }
 0x121   : > { %v798_v33 = vmul.f32 %v2401_v23, %v3239_v21  ;;  %v801_v17 = vmul.f32 %v2421_v11, %v3244_v53  ;;  %1492 = vpow2.f32 %v502_v61  ;;  %v3249_v6 = vunpack.c.l.bf16 %v2053_v47 }
 0x122   : > { %v935_v28 = vadd.f32 %v2455_v9, %v2451_v42  ;;  %1494 = vpow2.f32 %v504_v39  ;;  %v3252_v5 = vunpack.c.h.bf16 %v2261_v59  ;;  %v514_v53 = vmul.f32 1.442695, %v2353_v37 }
 0x123   : > { %927 = vadd.xlane.f32.xlu0 %v926_v7  ;;  %849 = vadd.xlane.f32.xlu1 %v848_v12  ;;  %v932_v7 = vadd.f32 %v2437_v58, %v2433_v31  ;;  %v854_v29 = vadd.f32 %v799_v1, %v798_v33  ;;  %v412_v12 = vpop.xlane.xlu0 %411  ;;  %v857_v19 = vadd.f32 %v801_v17, %v800_v8  ;;  %v415_v21 = vpop.xlane.xlu1 %414  ;;  %1496 = vpow2.f32 %v498_v20 }
 0x124   : > { %v2469_v14 = vsub.f32 %v3245_v45, %v412_v12  ;;  %v802_v33 = vmul.f32 %v2433_v31, %v3247_v56  ;;  %v803_v1 = vmul.f32 %v2437_v58, %v3248_v36  ;;  %v2491_v15 = vsub.f32 %v3249_v6, %v415_v21 }
 0x125   : > { %v805_v16 = vmul.f32 %v2455_v9, %v3252_v5  ;;  %v510_v8 = vmul.f32 1.442695, %v2331_v2  ;;  %v516_v39 = vmul.f32 1.442695, %v2357_v52  ;;  %v3253_v45 = vunpack.c.l.bf16 %v2270_v27 }
 0x126   : > { %v3254_v2 = vunpack.c.h.bf16 %v2270_v27  ;;  %v3255_v20 = vunpack.c.l.bf16 %v2152_v40  ;;  %v3256_v52 = vunpack.c.h.bf16 %v2152_v40  ;;  %v518_v56 = vmul.f32 1.442695, %v2369_v13 }
 0x127   : > { %930 = vadd.xlane.f32.xlu0 %v929_v48  ;;  %852 = vadd.xlane.f32.xlu1 %v851_v57  ;;  %v3246_v48 = vunpack.c.h.bf16 %v2050_v46  ;;  %v500_v46 = vmul.f32 1.442695, %v2315_v0  ;;  %v2486_v38 = vpop.xlane.xlu0 %417  ;;  %v860_v0 = vadd.f32 %v803_v1, %v802_v33  ;;  %v1489_v61 = vpop.eup %1488  ;;  %v520_v27 = vmul.f32 1.442695, %v2373_v43 }
 0x128   : > { %v1491_v37 = vpop.eup %1490  ;;  %v522_v1 = vmul.f32 1.442695, %v2385_v22  ;;  %v3257_v40 = vunpack.c.l.bf16 %v2279_v25  ;;  %v3258_v13 = vunpack.c.h.bf16 %v2279_v25  ;;  %v526_v43 = vmul.f32 1.442695, %v2401_v23 }
 0x129   : > { %v2473_v57 = vsub.f32 %v3246_v48, %v412_v12  ;;  %v804_v12 = vmul.f32 %v2451_v42, %v3251_v4  ;;  %1498 = vpow2.f32 %v500_v46  ;;  %v806_v48 = vmul.f32 %v2469_v14, %v3253_v45 }
 0x12a   : > { %1500 = vpow2.f32 %v506_v44  ;;  %v530_v4 = vmul.f32 1.442695, %v2417_v30  ;;  %v590_v23 = vadd.f32 %v1491_v37, %v1489_v61  ;;  %v538_v37 = vmul.f32 1.442695, %v2451_v42 }
 0x12b   : > { %933 = vadd.xlane.f32.xlu0 %v932_v7  ;;  %855 = vadd.xlane.f32.xlu1 %v854_v29  ;;  %v3250_v7 = vunpack.c.h.bf16 %v2053_v47  ;;  %v938_v29 = vadd.f32 %v2473_v57, %v2469_v14  ;;  %v512_v47 = vmul.f32 1.442695, %v2335_v10  ;;  %1502 = vpow2.f32 %v508_v3  ;;  %v1493_v33 = vpop.eup %1492 }
 0x12c   : > { %v863_v59 = vadd.f32 %v805_v16, %v804_v12  ;;  %v807_v10 = vmul.f32 %v2473_v57, %v3254_v2  ;;  %1504 = vpow2.f32 %v510_v8  ;;  %v1495_v36 = vpop.eup %1494  ;;  %v532_v12 = vmul.f32 1.442695, %v2421_v11 }
 0x12d   : > { %v2495_v49 = vsub.f32 %v3250_v7, %v415_v21  ;;  %v783_v21 = vmul.f32 %v2297_v32, %v3256_v52  ;;  %1506 = vpow2.f32 %v512_v47  ;;  %v808_v32 = vmul.f32 %v2491_v15, %v3257_v40  ;;  %v1497_v6 = vpop.eup %1496 }
 0x12e   : > { %1508 = vpow2.f32 %v514_v53  ;;  %v866_v46 = vadd.f32 %v807_v10, %v806_v48  ;;  %v536_v47 = vmul.f32 1.442695, %v2437_v58  ;;  %v2546_v53 = vld [vmem:[%s1943_s24 + $0xa0] sm:$0xff]  ;;  %v3259_v11 = vunpack.c.l.bf16 %v2116_v51 }
 0x12f   : > { %936 = vadd.xlane.f32.xlu0 %v935_v28  ;;  %858 = vadd.xlane.f32.xlu1 %v857_v19  ;;  %v941_v17 = vadd.f32 %v2495_v49, %v2491_v15  ;;  %v2517_v28 = vpop.xlane.xlu0 %423  ;;  %v782_v19 = vmul.f32 %v2293_v26, %v3255_v20  ;;  %1510 = vpow2.f32 %v516_v39  ;;  %v524_v26 = vmul.f32 1.442695, %v2389_v62 }
 0x130   : > { %v809_v3 = vmul.f32 %v2495_v49, %v3258_v13  ;;  %1512 = vpow2.f32 %v518_v56  ;;  %v596_v39 = vadd.f32 %v1495_v36, %v1493_v33  ;;  %v366_v58 = vunpack.c.l.bf16 %v2546_v53 }
 0x131   : > { %v830_v44 = vadd.f32 %v783_v21, %v782_v19  ;;  %1514 = vpow2.f32 %v520_v27  ;;  %v367_v2 = vunpack.c.h.bf16 %v2546_v53  ;;  %v540_v19 = vmul.f32 1.442695, %v2455_v9 }
 0x132   : > { %v2539_v62 = vadd.f32 %v809_v3, %v808_v32  ;;  %1516 = vpow2.f32 %v522_v1  ;;  %v542_v9 = vmul.f32 1.442695, %v2469_v14  ;;  %v546_v13 = vmul.f32 1.442695, %v2491_v15 }
 0x133   : > { %939 = vadd.xlane.f32.xlu0 %v938_v29  ;;  %861 = vadd.xlane.f32.xlu1 %v860_v0  ;;  %v2536_v7 = vpop.xlane.xlu0 %429  ;;  %v1499_v22 = vpop.eup %1498  ;;  %v528_v29 = vmul.f32 1.442695, %v2405_v41  ;;  %1518 = vpow2.f32 %v524_v26  ;;  %v534_v41 = vmul.f32 1.442695, %v2433_v31  ;;  %v548_v14 = vmul.f32 1.442695, %v2495_v49 }
 0x134   : > { %v1501_v0 = vpop.eup %1500  ;;  %1520 = vpow2.f32 %v526_v43  ;;  %v593_v5 = vadd.f32 %v1499_v22, %v1497_v6  ;;  %v3261_v6 = vunpack.c.l.bf16 %v2068_v54 }
 0x135   : > { %v1503_v25 = vpop.eup %1502  ;;  %1522 = vpow2.f32 %v528_v29  ;;  %v3262_v29 = vunpack.c.h.bf16 %v2068_v54 }
 0x136   : > { %v1505_v16 = vpop.eup %1504  ;;  %1524 = vpow2.f32 %v530_v4  ;;  %v599_v48 = vadd.f32 %v1503_v25, %v1501_v0  ;;  %v2579_v43 = vsub.f32 %v3261_v6, %v2486_v38  ;;  %v421_v4 = vpop.xlane.xlu1 %420 }
 0x137   : > { %942 = vadd.xlane.f32.xlu0 %v941_v17  ;;  %864 = vadd.xlane.f32.xlu1 %v863_v59  ;;  %v1507_v8 = vpop.eup %1506  ;;  %v436_v30 = vpop.xlane.xlu0 %435  ;;  %1526 = vpow2.f32 %v532_v12  ;;  %v3260_v59 = vunpack.c.h.bf16 %v2116_v51  ;;  %v2585_v0 = vsub.f32 %v3262_v29, %v2486_v38  ;;  %v3263_v38 = vunpack.c.l.bf16 %v2071_v55 }
 0x138   : > { %v1509_v17 = vpop.eup %1508  ;;  %v2550_v61 = vsub.f32 %v3259_v11, %v436_v30  ;;  %1528 = vpow2.f32 %v534_v41  ;;  %v602_v51 = vadd.f32 %v1507_v8, %v1505_v16  ;;  %v550_v54 = vmul.f32 1.442695, %v2579_v43  ;;  %v2597_v41 = vld [vmem:[%s1943_s24 + $0x78] sm:$0xff] }
 0x139   : > { %v2554_v45 = vsub.f32 %v3260_v59, %v436_v30  ;;  %v1511_v31 = vpop.eup %1510  ;;  %1530 = vpow2.f32 %v536_v47  ;;  %v2594_v16 = vsub.f32 %v3263_v38, %v421_v4  ;;  %v552_v8 = vmul.f32 1.442695, %v2585_v0 }
 0x13a   : > { %v1513_v10 = vpop.eup %1512  ;;  %v822_v52 = vmul.f32 %v2550_v61, %v366_v58  ;;  %v605_v33 = vadd.f32 %v1511_v31, %v1509_v17  ;;  %1532 = vpow2.f32 %v538_v37  ;;  %v3264_v30 = vunpack.c.h.bf16 %v2071_v55 }
 0x13b   : > { %831 = vadd.xlane.f32.xlu0 %v830_v44  ;;  %867 = vadd.xlane.f32.xlu1 %v866_v46  ;;  %v1515_v20 = vpop.eup %1514  ;;  %v823_v21 = vmul.f32 %v2554_v45, %v367_v2  ;;  %v2566_v27 = vpop.xlane.xlu0 %441  ;;  %v2572_v46 = vld [vmem:[%s1943_s24 + $0x70] sm:$0xff]  ;;  %1534 = vpow2.f32 %v540_v19  ;;  %v544_v44 = vmul.f32 1.442695, %v2473_v57  ;;  %v357_v11 = vunpack.c.h.bf16 %v2597_v41 }
 0x13c   : > { %v1517_v56 = vpop.eup %1516  ;;  %v608_v40 = vadd.f32 %v1515_v20, %v1513_v10  ;;  %v354_v57 = vunpack.c.l.bf16 %v2572_v46  ;;  %v355_v15 = vunpack.c.h.bf16 %v2572_v46  ;;  %1536 = vpow2.f32 %v542_v9 }
 0x13d   : > { %v1519_v36 = vpop.eup %1518  ;;  %v2568_v42 = vadd.f32 %v823_v21, %v822_v52  ;;  %1538 = vpow2.f32 %v544_v44  ;;  %v2606_v17 = vsub.f32 %v3264_v30, %v421_v4  ;;  %v554_v37 = vmul.f32 1.442695, %v2594_v16 }
 0x13e   : > { %v1521_v1 = vpop.eup %1520  ;;  %v611_v3 = vadd.f32 %v1519_v36, %v1517_v56  ;;  %1540 = vpow2.f32 %v546_v13  ;;  %v752_v47 = vadd.f32 %v355_v15, %v354_v57  ;;  %v3266_v19 = vunpack.c.h.bf16 %v2084_v60  ;;  %v427_v56 = vpop.xlane.xlu1 %426 }
 0x13f   : > { %591 = vadd.xlane.f32.xlu0 %v590_v23  ;;  %594 = vadd.xlane.f32.xlu1 %v593_v5  ;;  %v1523_v26 = vpop.eup %1522  ;;  %v2589_v25 = vpop.xlane.xlu0 %711  ;;  %1542 = vpow2.f32 %v548_v14  ;;  %v556_v52 = vmul.f32 1.442695, %v2606_v17  ;;  %v944_v21 = vadd.f32 %v2585_v0, %v2579_v43  ;;  %v3267_v9 = vunpack.c.l.bf16 %v2089_v63 }
 0x140   : > { %v1525_v32 = vpop.eup %1524  ;;  %v614_v23 = vadd.f32 %v1523_v26, %v1521_v1  ;;  %1544 = vpow2.f32 %v550_v54 }
 0x141   : > { %v1527_v22 = vpop.eup %1526  ;;  %1546 = vpow2.f32 %v552_v8  ;;  %v2629_v26 = vsub.f32 %v3267_v9, %v427_v56 }
 0x142   : > { %v1529_v12 = vpop.eup %1528  ;;  %v617_v5 = vadd.f32 %v1527_v22, %v1525_v32  ;;  %1548 = vpow2.f32 %v554_v37  ;;  %v3269_v22 = vunpack.c.l.bf16 %v2102_v24 }
 0x143   : > { %597 = vadd.xlane.f32.xlu0 %v596_v39  ;;  %600 = vadd.xlane.f32.xlu1 %v599_v48  ;;  %v1531_v49 = vpop.eup %1530  ;;  %v356_v39 = vunpack.c.l.bf16 %v2597_v41  ;;  %v3265_v48 = vunpack.c.l.bf16 %v2084_v60  ;;  %v2616_v20 = vpop.xlane.xlu0 %720  ;;  %1550 = vpow2.f32 %v556_v52  ;;  %v562_v4 = vmul.f32 1.442695, %v2629_v26 }
 0x144   : > { %v1533_v59 = vpop.eup %1532  ;;  %v620_v31 = vadd.f32 %v1531_v49, %v1529_v12  ;;  %v2645_v14 = vsub.f32 %v3269_v22, %v2536_v7  ;;  %v2649_v12 = vld [vmem:[%s1943_s24 + $0x80] sm:$0xff]  ;;  %v574_v22 = vmul.f32 1.442695, %v2550_v61 }
 0x145   : > { %v2613_v10 = vsub.f32 %v3265_v48, %v2517_v28  ;;  %v1535_v55 = vpop.eup %1534  ;;  %v755_v44 = vadd.f32 %v357_v11, %v356_v39  ;;  %v358_v30 = vunpack.c.l.bf16 %v2649_v12 }
 0x146   : > { %v623_v1 = vadd.f32 %v1535_v55, %v1533_v59  ;;  %v359_v59 = vunpack.c.h.bf16 %v2649_v12 }
 0x147   : > { %603 = vadd.xlane.f32.xlu0 %v602_v51  ;;  %606 = vadd.xlane.f32.xlu1 %v605_v33  ;;  %v2621_v51 = vsub.f32 %v3266_v19, %v2517_v28  ;;  %v1537_v33 = vpop.eup %1536  ;;  %v558_v36 = vmul.f32 1.442695, %v2613_v10  ;;  %v3272_v19 = vunpack.c.h.bf16 %v2107_v35 }
 0x148   : > { %v1539_v60 = vpop.eup %1538  ;;  %v758_v55 = vadd.f32 %v359_v59, %v358_v30 }
 0x149   : > { %v560_v28 = vmul.f32 1.442695, %v2621_v51  ;;  %v1541_v13 = vpop.eup %1540  ;;  %1552 = vpow2.f32 %v558_v36  ;;  %v626_v29 = vadd.f32 %v1539_v60, %v1537_v33 }
 0x14a   : > { %v1543_v6 = vpop.eup %1542 }
 0x14b   : > { %609 = vadd.xlane.f32.xlu0 %v608_v40  ;;  %612 = vadd.xlane.f32.xlu1 %v611_v3  ;;  %v3268_v40 = vunpack.c.h.bf16 %v2089_v63  ;;  %v2640_v3 = vpop.xlane.xlu0 %723  ;;  %1554 = vpow2.f32 %v560_v28  ;;  %v3270_v63 = vunpack.c.h.bf16 %v2102_v24  ;;  %v1545_v54 = vpop.eup %1544  ;;  %v629_v38 = vadd.f32 %v1543_v6, %v1541_v13 }
 0x14c   : > { %v1547_v8 = vpop.eup %1546  ;;  %v566_v24 = vmul.f32 1.442695, %v2645_v14  ;;  %1556 = vpow2.f32 %v562_v4 }
 0x14d   : > { %v2638_v32 = vsub.f32 %v3268_v40, %v427_v56  ;;  %v632_v56 = vadd.f32 %v1547_v8, %v1545_v54  ;;  %v950_v40 = vadd.f32 %v2621_v51, %v2613_v10 }
 0x14f   : > { %615 = vadd.xlane.f32.xlu0 %v614_v23  ;;  %618 = vadd.xlane.f32.xlu1 %v617_v5  ;;  %v2654_v23 = vsub.f32 %v3270_v63, %v2536_v7  ;;  %v564_v49 = vmul.f32 1.442695, %v2638_v32  ;;  %v433_v5 = vpop.xlane.xlu1 %432  ;;  %v3271_v7 = vunpack.c.l.bf16 %v2107_v35  ;;  %v2666_v48 = vpop.xlane.xlu0 %726 }
 0x150   : > { %v2675_v52 = vsub.f32 %v3272_v19, %v433_v5 }
 0x151   : > { %v568_v37 = vmul.f32 1.442695, %v2654_v23  ;;  %1558 = vpow2.f32 %v564_v49  ;;  %v956_v12 = vadd.f32 %v2654_v23, %v2645_v14 }
 0x152   : > { %1560 = vpow2.f32 %v566_v24  ;;  %v572_v9 = vmul.f32 1.442695, %v2675_v52  ;;  %v3274_v24 = vunpack.c.h.bf16 %v2125_v18 }
 0x153   : > { %753 = vadd.xlane.f32.xlu0 %v752_v47  ;;  %621 = vadd.xlane.f32.xlu1 %v620_v31  ;;  %v947_v47 = vadd.f32 %v2606_v17, %v2594_v16  ;;  %v2664_v31 = vsub.f32 %v3271_v7, %v433_v5  ;;  %1562 = vpow2.f32 %v568_v37  ;;  %v439_v63 = vpop.xlane.xlu1 %438 }
 0x154   : > { %v2694_v7 = vsub.f32 %v3274_v24, %v439_v63 }
 0x155   : > { %v570_v36 = vmul.f32 1.442695, %v2664_v31 }
 0x157   : > { %945 = vadd.xlane.f32.xlu0 %v944_v21  ;;  %624 = vadd.xlane.f32.xlu1 %v623_v1  ;;  %v1549_v21 = vpop.eup %1548  ;;  %v319_v1 = vld [vmem:[%s1943_s24 + $0x88] sm:$0xff]  ;;  %1564 = vpow2.f32 %v570_v36 }
 0x158   : > { %v1551_v33 = vpop.eup %1550  ;;  %v360_v13 = vunpack.c.l.bf16 %v319_v1  ;;  %v361_v6 = vunpack.c.h.bf16 %v319_v1  ;;  %1566 = vpow2.f32 %v572_v9  ;;  %v321_v1 = vld [vmem:[%s1943_s24 + $0x98] sm:$0xff]  ;;  %v580_v9 = vmul.f32 1.442695, %v2694_v7 }
 0x159   : > { %v1553_v60 = vpop.eup %1552  ;;  %v635_v28 = vadd.f32 %v1551_v33, %v1549_v21  ;;  %1568 = vpow2.f32 %v574_v22  ;;  %v953_v21 = vadd.f32 %v2638_v32, %v2629_v26  ;;  %v364_v22 = vunpack.c.l.bf16 %v321_v1 }
 0x15a   : > { %v1555_v35 = vpop.eup %1554  ;;  %v761_v4 = vadd.f32 %v361_v6, %v360_v13  ;;  %v817_v33 = vmul.f32 %v2638_v32, %v361_v6  ;;  %v3276_v32 = vunpack.c.h.bf16 %v2134_v34 }
 0x15b   : > { %756 = vadd.xlane.f32.xlu0 %v755_v44  ;;  %627 = vadd.xlane.f32.xlu1 %v626_v29  ;;  %v2680_v44 = vpop.xlane.xlu0 %729  ;;  %v576_v29 = vmul.f32 1.442695, %v2554_v45  ;;  %v1557_v49 = vpop.eup %1556  ;;  %v638_v5 = vadd.f32 %v1555_v35, %v1553_v60 }
 0x15c   : > { %v1559_v54 = vpop.eup %1558  ;;  %v2713_v6 = vsub.f32 %v3276_v32, %v2566_v27  ;;  %v811_v32 = vmul.f32 %v2585_v0, %v355_v15 }
 0x15d   : > { %1570 = vpow2.f32 %v576_v29  ;;  %v1561_v37 = vpop.eup %1560  ;;  %v365_v29 = vunpack.c.h.bf16 %v321_v1 }
 0x15e   : > { %v1563_v19 = vpop.eup %1562  ;;  %v584_v24 = vmul.f32 1.442695, %v2713_v6 }
 0x15f   : > { %948 = vadd.xlane.f32.xlu0 %v947_v47  ;;  %630 = vadd.xlane.f32.xlu1 %v629_v38  ;;  %v3273_v38 = vunpack.c.l.bf16 %v2125_v18  ;;  %v2690_v47 = vpop.xlane.xlu0 %732  ;;  %v644_v60 = vadd.f32 %v1563_v19, %v1561_v37  ;;  %v445_v37 = vpop.xlane.xlu1 %444  ;;  %v821_v19 = vmul.f32 %v2675_v52, %v365_v29 }
 0x161   : > { %v2688_v8 = vsub.f32 %v3273_v38, %v439_v63  ;;  %v1565_v18 = vpop.eup %1564 }
 0x162   : > { %v1567_v35 = vpop.eup %1566 }
 0x163   : > { %759 = vadd.xlane.f32.xlu0 %v758_v55  ;;  %633 = vadd.xlane.f32.xlu1 %v632_v56  ;;  %v641_v55 = vadd.f32 %v1559_v54, %v1557_v49  ;;  %v816_v56 = vmul.f32 %v2629_v26, %v360_v13  ;;  %v578_v36 = vmul.f32 1.442695, %v2688_v8  ;;  %v3275_v26 = vunpack.c.l.bf16 %v2134_v34  ;;  %v1569_v63 = vpop.eup %1568 }
 0x164   : > { %v647_v49 = vadd.f32 %v1567_v35, %v1565_v18 }
 0x165   : > { %v2708_v13 = vsub.f32 %v3275_v26, %v2566_v27  ;;  %1572 = vpow2.f32 %v578_v36  ;;  %v959_v27 = vadd.f32 %v2675_v52, %v2664_v31  ;;  %v3278_v36 = vunpack.c.h.bf16 %v2143_v50 }
 0x166   : > { %1574 = vpow2.f32 %v580_v9  ;;  %v810_v26 = vmul.f32 %v2579_v43, %v354_v57  ;;  %v2750_v43 = vld [vmem:[%s1943_s24 + $0xb8] sm:$0xff] }
 0x167   : > { %951 = vadd.xlane.f32.xlu0 %v950_v40  ;;  %636 = vadd.xlane.f32.xlu1 %v635_v28  ;;  %v2703_v28 = vpop.xlane.xlu0 %735  ;;  %v881_v40 = vadd.f32 %v817_v33, %v816_v56  ;;  %v582_v54 = vmul.f32 1.442695, %v2708_v13  ;;  %v323_v33 = vld [vmem:[%s1943_s24 + $0xa8] sm:$0xff]  ;;  %v2730_v1 = vsub.f32 %v3278_v36, %v445_v37  ;;  %v372_v15 = vunpack.c.l.bf16 %v2750_v43  ;;  %v320_v36 = vld [vmem:[%s1943_s24 + $0x90] sm:$0xff] }
 0x168   : > { %v368_v35 = vunpack.c.l.bf16 %v323_v33  ;;  %v369_v52 = vunpack.c.h.bf16 %v323_v33 }
 0x169   : > { %1576 = vpow2.f32 %v582_v54 }
 0x16a   : > { %1578 = vpow2.f32 %v584_v24  ;;  %v825_v54 = vmul.f32 %v2694_v7, %v369_v52  ;;  %v872_v24 = vadd.f32 %v811_v32, %v810_v26 }
 0x16b   : > { %762 = vadd.xlane.f32.xlu0 %v761_v4  ;;  %639 = vadd.xlane.f32.xlu1 %v638_v5  ;;  %v767_v4 = vadd.f32 %v365_v29, %v364_v22  ;;  %v1571_v5 = vpop.eup %1570  ;;  %v2716_v38 = vpop.xlane.xlu0 %738  ;;  %v773_v29 = vadd.f32 %v369_v52, %v368_v35 }
 0x16c   : > { %v650_v34 = vadd.f32 %v1571_v5, %v1569_v63  ;;  %v824_v5 = vmul.f32 %v2688_v8, %v368_v35  ;;  %v363_v35 = vunpack.c.h.bf16 %v320_v36 }
 0x16e   : > { %v893_v57 = vadd.f32 %v825_v54, %v824_v5  ;;  %v324_v5 = vld [vmem:[%s1943_s24 + $0xb0] sm:$0xff] }
 0x16f   : > { %954 = vadd.xlane.f32.xlu0 %v953_v21  ;;  %642 = vadd.xlane.f32.xlu1 %v641_v55  ;;  %v820_v55 = vmul.f32 %v2664_v31, %v364_v22  ;;  %v3277_v21 = vunpack.c.l.bf16 %v2143_v50  ;;  %v1573_v9 = vpop.eup %1572  ;;  %v2732_v18 = vpop.xlane.xlu0 %741  ;;  %v588_v22 = vmul.f32 1.442695, %v2730_v1 }
 0x171   : > { %v2725_v56 = vsub.f32 %v3277_v21, %v445_v37  ;;  %v887_v31 = vadd.f32 %v821_v19, %v820_v55  ;;  %v373_v37 = vunpack.c.h.bf16 %v2750_v43  ;;  %v2766_v19 = vpop.xlane.xlu1 %714  ;;  %v1143_v43 = vlaneseq }
 0x173   : > { %882 = vadd.xlane.f32.xlu0 %v881_v40  ;;  %645 = vadd.xlane.f32.xlu1 %v644_v60  ;;  %v1575_v60 = vpop.eup %1574  ;;  %v586_v40 = vmul.f32 1.442695, %v2725_v56  ;;  %v971_v41 = vadd.f32 %v2730_v1, %v2725_v56 }
 0x174   : > { %v653_v50 = vadd.f32 %v1575_v60, %v1573_v9  ;;  %v1577_v63 = vpop.eup %1576 }
 0x175   : > { %1580 = vpow2.f32 %v586_v40 }
 0x176   : > { %1582 = vpow2.f32 %v588_v22 }
 0x177   : > { %768 = vadd.xlane.f32.xlu0 %v767_v4  ;;  %648 = vadd.xlane.f32.xlu1 %v647_v49  ;;  %v2743_v4 = vpop.xlane.xlu0 %744  ;;  %v1579_v49 = vpop.eup %1578 }
 0x178   : > { %v656_v46 = vadd.f32 %v1579_v49, %v1577_v63  ;;  %v770_v63 = vadd.f32 %v367_v2, %v366_v58 }
 0x17b   : > { %960 = vadd.xlane.f32.xlu0 %v959_v27  ;;  %651 = vadd.xlane.f32.xlu1 %v650_v34  ;;  %v2752_v0 = vpop.xlane.xlu0 %747  ;;  %v812_v34 = vmul.f32 %v2594_v16, %v356_v39  ;;  %v815_v39 = vmul.f32 %v2621_v51, %v359_v59  ;;  %v819_v59 = vmul.f32 %v2654_v23, %v363_v35 }
 0x17c   : > { %3279 = vst [vmem:[#allocation11_spill] sm:$0xff] %v2752_v0 }
 0x17f   : > { %888 = vadd.xlane.f32.xlu0 %v887_v31  ;;  %870 = vadd.xlane.f32.xlu1 %v2539_v62  ;;  %v965_v62 = vadd.f32 %v2694_v7, %v2688_v8  ;;  %v813_v8 = vmul.f32 %v2606_v17, %v357_v11  ;;  %v779_v7 = vadd.f32 %v373_v37, %v372_v15  ;;  %v1581_v27 = vpop.eup %1580  ;;  %v2768_v33 = vpop.xlane.xlu0 %750  ;;  %v362_v31 = vunpack.c.l.bf16 %v320_v36 }
 0x180   : > { %v1583_v55 = vpop.eup %1582  ;;  %3280 = vst [vmem:[#allocation12_spill] sm:$0xff] %v2768_v33  ;;  %v814_v17 = vmul.f32 %v2613_v10, %v358_v30  ;;  %v2778_v11 = vpop.xlane.xlu1 %717 }
 0x181   : > { %v875_v21 = vadd.f32 %v813_v8, %v812_v34  ;;  %v659_v16 = vadd.f32 %v1583_v55, %v1581_v27  ;;  %v764_v40 = vadd.f32 %v363_v35, %v362_v31  ;;  %v818_v30 = vmul.f32 %v2645_v14, %v362_v31 }
 0x182   : > { %v878_v60 = vadd.f32 %v815_v39, %v814_v17  ;;  %v2860_v35 = vstv %s1142_s20 }
 0x183   : > { %774 = vadd.xlane.f32.xlu0 %v773_v29  ;;  %654 = vadd.xlane.f32.xlu1 %v653_v50  ;;  %v884_v26 = vadd.f32 %v819_v59, %v818_v30 }
 0x187   : > { %966 = vadd.xlane.f32.xlu0 %v965_v62  ;;  %873 = vadd.xlane.f32.xlu1 %v872_v24  ;;  %v962_v62 = vadd.f32 %v2554_v45, %v2550_v61  ;;  %v968_v61 = vadd.f32 %v2713_v6, %v2708_v13 }
 0x18b   : > { %894 = vadd.xlane.f32.xlu0 %v893_v57  ;;  %657 = vadd.xlane.f32.xlu1 %v656_v46  ;;  %v370_v46 = vunpack.c.l.bf16 %v324_v5  ;;  %v371_v57 = vunpack.c.h.bf16 %v324_v5 }
 0x18d   : > { %v776_v58 = vadd.f32 %v371_v57, %v370_v46  ;;  %v826_v45 = vmul.f32 %v2708_v13, %v370_v46 }
 0x18f   : > { %780 = vadd.xlane.f32.xlu0 %v779_v7  ;;  %876 = vadd.xlane.f32.xlu1 %v875_v21  ;;  %v827_v7 = vmul.f32 %v2713_v6, %v371_v57  ;;  %v828_v21 = vmul.f32 %v2725_v56, %v372_v15 }
 0x191   : > { %v896_v55 = vadd.f32 %v827_v7, %v826_v45 }
 0x193   : > { %972 = vadd.xlane.f32.xlu0 %v971_v41  ;;  %660 = vadd.xlane.f32.xlu1 %v659_v16  ;;  %v829_v16 = vmul.f32 %v2730_v1, %v373_v37  ;;  %v2858_v1 = vshrl.u32 %v1143_v43, 7 }
 0x194   : > { %v2781_v9 = vpop.xlane.xlu0 %903 }
 0x195   : > { %v899_v6 = vadd.f32 %v829_v16, %v828_v21  ;;  %v2865_v30 = vadd.s32 %v2860_v35, %v2858_v1  ;;  %v1148_v5 = vadd.s32 32, %v2858_v1  ;;  %v1151_v46 = vadd.s32 56, %v2858_v1 }
 0x196   : > { %v1150_v57 = vadd.s32 48, %v2858_v1 }
 0x197   : > { %879 = vadd.xlane.f32.xlu1 %v878_v60  ;;  %vm1193_vm0 = vcmp.lt.s32.totalorder %v2865_v30, 200  ;;  %v2888_v43 = vadd.s32 %v2860_v35, %v1148_v5  ;;  %v2903_v5 = vadd.s32 64, %v2858_v1 }
 0x198   : > { %v2783_v52 = vpop.xlane.xlu0 %909  ;;  %v2785_v22 = vpop.xlane.xlu1 %906 }
 0x199   : > { %vm1197_vm5 = vcmp.lt.s32.totalorder %v2888_v43, 200 }
 0x19b   : > { %765 = vadd.xlane.f32.xlu1 %v764_v40  ;;  %v1145_v40 = vadd.s32 8, %v2858_v1 }
 0x19c   : > { %v2787_v10 = vpop.xlane.xlu0 %912  ;;  %v2789_v51 = vpop.xlane.xlu1 %834 }
 0x19f   : > { %957 = vadd.xlane.f32.xlu1 %v956_v12 }
 0x1a0   : > { %v2795_v29 = vpop.xlane.xlu0 %915  ;;  %v2797_v50 = vpop.xlane.xlu1 %837 }
 0x1a3   : > { %885 = vadd.xlane.f32.xlu1 %v884_v26  ;;  %v1147_v26 = vadd.s32 24, %v2858_v1 }
 0x1a4   : > { %v2799_v32 = vpop.xlane.xlu0 %918  ;;  %v2805_v49 = vpop.xlane.xlu1 %840 }
 0x1a7   : > { %771 = vadd.xlane.f32.xlu1 %v770_v63  ;;  %v1146_v63 = vadd.s32 16, %v2858_v1 }
 0x1a8   : > { %v2807_v14 = vpop.xlane.xlu0 %921  ;;  %v2809_v23 = vpop.xlane.xlu1 %843 }
 0x1a9   : > { %v2881_v21 = vadd.s32 %v2860_v35, %v1146_v63 }
 0x1ab   : > { %963 = vadd.xlane.f32.xlu1 %v962_v62  ;;  %v1149_v62 = vadd.s32 40, %v2858_v1  ;;  %vm1195_vm3 = vcmp.lt.s32.totalorder %v2881_v21, 200 }
 0x1ac   : > { %v2814_v54 = vpop.xlane.xlu0 %924  ;;  %v2816_v24 = vpop.xlane.xlu1 %846 }
 0x1ad   : > { %v2884_v16 = vadd.s32 %v2860_v35, %v1149_v62 }
 0x1af   : > { %891 = vadd.xlane.f32.xlu1 %v2568_v42  ;;  %vm1198_vm6 = vcmp.lt.s32.totalorder %v2884_v16, 200 }
 0x1b0   : > { %v2819_v53 = vpop.xlane.xlu0 %927  ;;  %v2821_v2 = vpop.xlane.xlu1 %849 }
 0x1b3   : > { %777 = vadd.xlane.f32.xlu1 %v776_v58  ;;  %v1153_v58 = vadd.s32 72, %v2858_v1 }
 0x1b4   : > { %v2823_v34 = vpop.xlane.xlu0 %930  ;;  %v2825_v8 = vpop.xlane.xlu1 %852 }
 0x1b7   : > { %969 = vadd.xlane.f32.xlu1 %v968_v61  ;;  %v2875_v61 = vadd.s32 %v2860_v35, %v1145_v40  ;;  %v2897_v40 = vadd.s32 %v2860_v35, %v1153_v58  ;;  %v2908_v58 = vmul.f32 0.00390625, %v2795_v29  ;;  %v2920_v29 = vmul.f32 0.00390625, %v2814_v54 }
 0x1b8   : > { %v2831_v27 = vpop.xlane.xlu0 %933  ;;  %v2833_v42 = vpop.xlane.xlu1 %855 }
 0x1b9   : > { %vm1194_vm1 = vcmp.lt.s32.totalorder %v2875_v61, 200  ;;  %vm1202_vm9 = vcmp.lt.s32.totalorder %v2897_v40, 200 }
 0x1bb   : > { %897 = vadd.xlane.f32.xlu1 %v896_v55  ;;  %v2878_v55 = vadd.s32 %v2860_v35, %v1147_v26  ;;  %v1024_v26 = vmul.f32 0.00390625, %v2783_v52 }
 0x1bc   : > { %v2841_v41 = vpop.xlane.xlu0 %936  ;;  %v2843_v13 = vpop.xlane.xlu1 %858 }
 0x1bd   : > { %vm1196_vm4 = vcmp.lt.s32.totalorder %v2878_v55, 200 }
 0x1bf   : > { %900 = vadd.xlane.f32.xlu1 %v899_v6 }
 0x1c0   : > { %v2845_v17 = vpop.xlane.xlu0 %939  ;;  %v2847_v39 = vpop.xlane.xlu1 %861 }
 0x1c4   : > { %v2849_v36 = vpop.xlane.xlu0 %942  ;;  %v2851_v60 = vpop.xlane.xlu1 %864 }
 0x1c5   : > { %3281 = vst [vmem:[#allocation13_spill] sm:$0xff] %v2849_v36  ;;  %3282 = vst [vmem:[#allocation14_spill] sm:$0xff] %v2851_v60  ;;  %v2915_v36 = vmul.f32 0.00390625, %v2807_v14 }
 0x1c8   : > { %v2853_v56 = vpop.xlane.xlu0 %831  ;;  %v2855_v15 = vpop.xlane.xlu1 %867 }
 0x1c9   : > { %3283 = vst [vmem:[#allocation15_spill] sm:$0xff] %v2855_v15 }
 0x1cc   : > { %v592_v37 = vpop.xlane.xlu0 %591  ;;  %v595_v31 = vpop.xlane.xlu1 %594 }
 0x1cd   : > { %1584 = vlog2.f32 %v592_v37  ;;  %v2891_v37 = vadd.s32 %v2860_v35, %v1151_v46  ;;  %v1023_v46 = vmul.f32 0.00390625, %v2785_v22 }
 0x1ce   : > { %1586 = vlog2.f32 %v595_v31  ;;  %v2894_v31 = vadd.s32 %v2860_v35, %v1150_v57  ;;  %v1025_v57 = vmul.f32 0.00390625, %v2787_v10 }
 0x1cf   : > { %vm1200_vm7 = vcmp.lt.s32.totalorder %v2891_v37, 200 }
 0x1d0   : > { %v598_v12 = vpop.xlane.xlu0 %597  ;;  %v601_v59 = vpop.xlane.xlu1 %600  ;;  %vm1199_vm8 = vcmp.lt.s32.totalorder %v2894_v31, 200 }
 0x1d1   : > { %1588 = vlog2.f32 %v598_v12 }
 0x1d2   : > { %1590 = vlog2.f32 %v601_v59  ;;  %v1022_v59 = vmul.f32 0.00390625, %v2781_v9  ;;  %v2911_v9 = vmul.f32 0.00390625, %v2799_v32  ;;  %v2923_v32 = vmul.f32 0.00390625, %v2819_v53 }
 0x1d4   : > { %v604_v45 = vpop.xlane.xlu0 %603  ;;  %v607_v7 = vpop.xlane.xlu1 %606 }
 0x1d5   : > { %1592 = vlog2.f32 %v604_v45 }
 0x1d6   : > { %1594 = vlog2.f32 %v607_v7 }
 0x1d7   : > { %v1585_v6 = vpop.eup %1584 }
 0x1d8   : > { %v1587_v12 = vpop.eup %1586  ;;  %v663_v63 = vmul.f32 0.6931472, %v1585_v6  ;;  %v610_v62 = vpop.xlane.xlu0 %609 }
 0x1d9   : > { %v665_v45 = vmul.f32 0.6931472, %v1587_v12  ;;  %v613_v7 = vpop.xlane.xlu1 %612 }
 0x1da   : > { %v974_v52 = vmul.f32 %v2589_v25, %v663_v63  ;;  %v1046_v33 = vsub.f32 %v663_v63, %v1022_v59  ;;  %1596 = vlog2.f32 %v613_v7 }
 0x1db   : > { %v1589_v6 = vpop.eup %1588  ;;  %v975_v22 = vmul.f32 %v2766_v19, %v665_v45  ;;  %v1047_v15 = vsub.f32 %v665_v45, %v1023_v46  ;;  %1598 = vlog2.f32 %v610_v62 }
 0x1dc   : > { %v1591_v10 = vpop.eup %1590  ;;  %v998_v25 = vsub.f32 %v974_v52, %v2853_v56  ;;  %v667_v12 = vmul.f32 0.6931472, %v1589_v6  ;;  %v616_v14 = vpop.xlane.xlu0 %615  ;;  %v1094_v63 = vmul.f32 0.1, %v1046_v33 }
 0x1dd   : > { %v999_v59 = vsub.f32 %v975_v22, %v2789_v51  ;;  %v1095_v19 = vmul.f32 0.1, %v1047_v15  ;;  %v669_v46 = vmul.f32 0.6931472, %v1591_v10  ;;  %v619_v45 = vpop.xlane.xlu1 %618 }
 0x1de   : > { %v1070_v62 = vmul.f32 0.9, %v998_v25  ;;  %v976_v7 = vmul.f32 %v2778_v11, %v667_v12  ;;  %v1048_v54 = vsub.f32 %v667_v12, %v1024_v26  ;;  %1600 = vlog2.f32 %v619_v45 }
 0x1df   : > { %v1593_v0 = vpop.eup %1592  ;;  %v1071_v53 = vmul.f32 0.9, %v999_v59  ;;  %v977_v60 = vmul.f32 %v2616_v20, %v669_v46  ;;  %v1049_v56 = vsub.f32 %v669_v46, %v1025_v57  ;;  %1602 = vlog2.f32 %v616_v14 }
 0x1e0   : > { %v1595_v52 = vpop.eup %1594  ;;  %v1118_v6 = vadd.f32 %v1094_v63, %v1070_v62  ;;  %v1000_v51 = vsub.f32 %v976_v7, %v2797_v50  ;;  %v1096_v33 = vmul.f32 0.1, %v1048_v54  ;;  %v671_v15 = vmul.f32 0.6931472, %v1593_v0 }
 0x1e1   : > { %v1119_v22 = vadd.f32 %v1095_v19, %v1071_v53  ;;  %v1001_v11 = vsub.f32 %v977_v60, %v2805_v49  ;;  %v1097_v26 = vmul.f32 0.1, %v1049_v56  ;;  %v673_v10 = vmul.f32 0.6931472, %v1595_v52  ;;  %v622_v25 = vpop.xlane.xlu1 %621  ;;  %v2948_v56 = vpop.xlane.xlu0 %753 }
 0x1e2   : > { %v1217_v20 = vsel %vm1193_vm0, %v1118_v6, 0.0  ;;  %v1072_v57 = vmul.f32 0.9, %v1000_v51  ;;  %v978_v12 = vmul.f32 %v2640_v3, %v671_v15  ;;  %v1050_v14 = vsub.f32 %v671_v15, %v2908_v58 }
 0x1e3   : > { %v1218_v50 = vsel %vm1194_vm1, %v1119_v22, 0.0  ;;  %v1242_v59 = vsel %vm1241_vm2, %v1217_v20, 0.0  ;;  %v1073_v0 = vmul.f32 0.9, %v1001_v11  ;;  %v979_v19 = vmul.f32 %v2666_v48, %v673_v10 }
 0x1e4   : > { %v1597_v49 = vpop.eup %1596  ;;  %v1243_v60 = vsel %vm1241_vm2, %v1218_v50, 0.0  ;;  %v1120_v63 = vadd.f32 %v1096_v33, %v1072_v57  ;;  %v1051_v30 = vsub.f32 %v673_v10, %v2911_v9  ;;  %v1002_v46 = vsub.f32 %v978_v12, %v2809_v23 }
 0x1e5   : > { %v1599_v45 = vpop.eup %1598  ;;  %v1244_v3 = vadd.f32 %v1243_v60, %v1242_v59  ;;  %v1121_v62 = vadd.f32 %v1097_v26, %v1073_v0  ;;  %v1003_v58 = vsub.f32 %v979_v19, %v2816_v24  ;;  %v1098_v61 = vmul.f32 0.1, %v1050_v14  ;;  %v625_v7 = vpop.xlane.xlu1 %624 }
 0x1e6   : > { %v1219_v54 = vsel %vm1195_vm3, %v1120_v63, 0.0  ;;  %v1099_v53 = vmul.f32 0.1, %v1051_v30  ;;  %v1074_v48 = vmul.f32 0.9, %v1002_v46  ;;  %1604 = vlog2.f32 %v622_v25 }
 0x1e7   : > { %v1220_v9 = vsel %vm1196_vm4, %v1121_v62, 0.0  ;;  %v1245_v23 = vsel %vm1241_vm2, %v1219_v54, 0.0  ;;  %v1075_v52 = vmul.f32 0.9, %v1003_v58  ;;  %v677_v6 = vmul.f32 0.6931472, %v1597_v49 }
 0x1e8   : > { %v1601_v24 = vpop.eup %1600  ;;  %v1247_v21 = vsel %vm1241_vm2, %v1220_v9, 0.0  ;;  %v1246_v51 = vadd.f32 %v1245_v23, %v1244_v3  ;;  %v1122_v33 = vadd.f32 %v1098_v61, %v1074_v48  ;;  %v675_v15 = vmul.f32 0.6931472, %v1599_v45 }
 0x1e9   : > { %v1603_v22 = vpop.eup %1602  ;;  %v1123_v11 = vadd.f32 %v1099_v53, %v1075_v52  ;;  %v981_v26 = vmul.f32 %v2690_v47, %v677_v6  ;;  %v1053_v55 = vsub.f32 %v677_v6, %v2920_v29  ;;  %v681_v10 = vmul.f32 0.6931472, %v1601_v24  ;;  %v628_v25 = vpop.xlane.xlu1 %627 }
 0x1ea   : > { %v1248_v20 = vadd.f32 %v1247_v21, %v1246_v51  ;;  %v1221_v57 = vsel %vm1197_vm5, %v1122_v33, 0.0  ;;  %v980_v12 = vmul.f32 %v2680_v44, %v675_v15  ;;  %v1052_v14 = vsub.f32 %v675_v15, %v2915_v36  ;;  %v2970_v44 = vpop.xlane.xlu0 %945 }
 0x1eb   : > { %v1031_v50 = vmul.f32 0.00390625, %v2823_v34  ;;  %v1222_v59 = vsel %vm1198_vm6, %v1123_v11, 0.0  ;;  %v1249_v0 = vsel %vm1241_vm2, %v1221_v57, 0.0  ;;  %v1005_v47 = vsub.f32 %v981_v26, %v2825_v8 }
 0x1ec   : > { %v1251_v29 = vsel %vm1241_vm2, %v1222_v59, 0.0  ;;  %v1250_v19 = vadd.f32 %v1249_v0, %v1248_v20  ;;  %v1101_v49 = vmul.f32 0.1, %v1053_v55  ;;  %v1004_v43 = vsub.f32 %v980_v12, %v2821_v2 }
 0x1ed   : > { %v1077_v36 = vmul.f32 0.9, %v1005_v47  ;;  %v983_v34 = vmul.f32 %v2716_v38, %v681_v10  ;;  %v1055_v60 = vsub.f32 %v681_v10, %v1031_v50  ;;  %v679_v16 = vmul.f32 0.6931472, %v1603_v22  ;;  %v631_v63 = vpop.xlane.xlu1 %630 }
 0x1ee   : > { %v1252_v30 = vadd.f32 %v1251_v29, %v1250_v19  ;;  %v1076_v46 = vmul.f32 0.9, %v1004_v43  ;;  %v1100_v45 = vmul.f32 0.1, %v1052_v14  ;;  %1606 = vlog2.f32 %v625_v7 }
 0x1ef   : > { %v1125_v8 = vadd.f32 %v1101_v49, %v1077_v36  ;;  %v1007_v3 = vsub.f32 %v983_v34, %v2843_v13  ;;  %v1177_v2 = vadd.s32 %v2860_v35, %v2903_v5  ;;  %v982_v62 = vmul.f32 %v2703_v28, %v679_v16 }
 0x1f0   : > { %v1605_v58 = vpop.eup %1604  ;;  %v1124_v61 = vadd.f32 %v1100_v45, %v1076_v46  ;;  %v1054_v54 = vsub.f32 %v679_v16, %v2923_v32  ;;  %v1154_v38 = vadd.s32 80, %v2858_v1  ;;  %1608 = vlog2.f32 %v628_v25  ;;  %v2987_v32 = vpop.xlane.xlu0 %756  ;;  %v3284_v46 = vld [vmem:[#allocation14_spill] sm:$0xff] }
 0x1f1   : > { %v1079_v53 = vmul.f32 0.9, %v1007_v3  ;;  %v1103_v48 = vmul.f32 0.1, %v1055_v60  ;;  %v1006_v9 = vsub.f32 %v982_v62, %v2833_v42  ;;  %v683_v7 = vmul.f32 0.6931472, %v1605_v58  ;;  %v2980_v23 = vpop.xlane.xlu1 %633 }
 0x1f2   : > { %v1032_v13 = vmul.f32 0.00390625, %v2831_v27  ;;  %v1224_v5 = vsel %vm1200_vm7, %v1125_v8, 0.0  ;;  %v1223_v28 = vsel %vm1199_vm8, %v1124_v61, 0.0  ;;  %v1102_v52 = vmul.f32 0.1, %v1054_v54  ;;  %v3285_v3 = vld [vmem:[#allocation11_spill] sm:$0xff] }
 0x1f3   : > { %v1253_v6 = vsel %vm1241_vm2, %v1223_v28, 0.0  ;;  %v1127_v24 = vadd.f32 %v1103_v48, %v1079_v53  ;;  %v1078_v21 = vmul.f32 0.9, %v1006_v9  ;;  %v984_v42 = vmul.f32 %v2732_v18, %v683_v7 }
 0x1f4   : > { %v1254_v51 = vadd.f32 %v1253_v6, %v1252_v30  ;;  %vm1201_vm10 = vcmp.lt.s32.totalorder %v1177_v2, 200  ;;  %v1179_v33 = vadd.s32 %v2860_v35, %v1154_v38  ;;  %v1056_v27 = vsub.f32 %v683_v7, %v1032_v13  ;;  %v3000_v12 = vpop.xlane.xlu0 %948 }
 0x1f5   : > { %v1255_v37 = vsel %vm1241_vm2, %v1224_v5, 0.0  ;;  %v1126_v15 = vadd.f32 %v1102_v52, %v1078_v21  ;;  %v1008_v31 = vsub.f32 %v984_v42, %v2847_v39  ;;  %v2994_v22 = vpop.xlane.xlu1 %636  ;;  %v1226_v26 = vsel %vm1202_vm9, %v1127_v24, 0.0 }
 0x1f6   : > { %v1256_v11 = vadd.f32 %v1255_v37, %v1254_v51  ;;  %v1104_v25 = vmul.f32 0.1, %v1056_v27  ;;  %vm1203_vm11 = vcmp.lt.s32.totalorder %v1179_v33, 200  ;;  %v1155_v57 = vadd.s32 88, %v2858_v1 }
 0x1f7   : > { %v1225_v55 = vsel %vm1201_vm10, %v1126_v15, 0.0  ;;  %v1080_v10 = vmul.f32 0.9, %v1008_v31  ;;  %v1033_v14 = vmul.f32 0.00390625, %v2841_v41  ;;  %v1259_v47 = vsel %vm1241_vm2, %v1226_v26, 0.0  ;;  %v3287_v15 = vld [vmem:[#allocation13_spill] sm:$0xff] }
 0x1f8   : > { %v1607_v18 = vpop.eup %1606  ;;  %v1257_v20 = vsel %vm1241_vm2, %v1225_v55, 0.0  ;;  %v1156_v29 = vadd.s32 96, %v2858_v1  ;;  %1610 = vlog2.f32 %v631_v63  ;;  %v1034_v34 = vmul.f32 0.00390625, %v2845_v17  ;;  %v3013_v63 = vpop.xlane.xlu0 %759  ;;  %v3286_v17 = vld [vmem:[#allocation15_spill] sm:$0xff]  ;;  %v3288_v55 = vld [vmem:[#allocation12_spill] sm:$0xff] }
 0x1f9   : > { %v1258_v39 = vadd.f32 %v1257_v20, %v1256_v11  ;;  %v1128_v50 = vadd.f32 %v1104_v25, %v1080_v10  ;;  %v685_v59 = vmul.f32 0.6931472, %v1607_v18  ;;  %v3003_v0 = vpop.xlane.xlu1 %639  ;;  %v1180_v60 = vadd.s32 %v2860_v35, %v1155_v57 }
 0x1fa   : > { %v1609_v40 = vpop.eup %1608  ;;  %v1157_v37 = vadd.s32 104, %v2858_v1  ;;  %v1035_v31 = vmul.f32 0.00390625, %v3287_v15  ;;  %1612 = vlog2.f32 %v2980_v23 }
 0x1fb   : > { %v1227_v19 = vsel %vm1203_vm11, %v1128_v50, 0.0  ;;  %v1260_v49 = vadd.f32 %v1259_v47, %v1258_v39  ;;  %v985_v43 = vmul.f32 %v2743_v4, %v685_v59  ;;  %v1057_v36 = vsub.f32 %v685_v59, %v1033_v14 }
 0x1fc   : > { %v1261_v41 = vsel %vm1241_vm2, %v1227_v19, 0.0  ;;  %v687_v16 = vmul.f32 0.6931472, %v1609_v40  ;;  %v1181_v4 = vadd.s32 %v2860_v35, %v1156_v29  ;;  %vm1204_vm12 = vcmp.lt.s32.totalorder %v1180_v60, 200  ;;  %v3018_v52 = vpop.xlane.xlu0 %951 }
 0x1fd   : > { %v1262_v30 = vadd.f32 %v1261_v41, %v1260_v49  ;;  %v1009_v45 = vsub.f32 %v985_v43, %v3284_v46  ;;  %v643_v8 = vpop.xlane.xlu1 %642  ;;  %v1105_v61 = vmul.f32 0.1, %v1057_v36  ;;  %v1182_v25 = vadd.s32 %v2860_v35, %v1157_v37 }
 0x1fe   : > { %v986_v2 = vmul.f32 %v3285_v3, %v687_v16  ;;  %v1058_v62 = vsub.f32 %v687_v16, %v1034_v34  ;;  %vm1205_vm13 = vcmp.lt.s32.totalorder %v1181_v4, 200  ;;  %1614 = vlog2.f32 %v2994_v22 }
 0x1ff   : > { %v1081_v58 = vmul.f32 0.9, %v1009_v45  ;;  %vm1206_vm14 = vcmp.lt.s32.totalorder %v1182_v25, 200  ;;  %1616 = vlog2.f32 %v3003_v0  ;;  %v1158_v0 = vadd.s32 112, %v2858_v1 }
 0x200   : > { %v1010_v54 = vsub.f32 %v986_v2, %v3286_v17  ;;  %v1106_v9 = vmul.f32 0.1, %v1058_v62  ;;  %v763_v11 = vpop.xlane.xlu0 %762  ;;  %1618 = vlog2.f32 %v643_v8 }
 0x201   : > { %v1129_v38 = vadd.f32 %v1105_v61, %v1081_v58  ;;  %v646_v53 = vpop.xlane.xlu1 %645  ;;  %v1036_v58 = vmul.f32 0.00390625, %v2970_v44 }
 0x202   : > { %v1082_v48 = vmul.f32 0.9, %v1010_v54  ;;  %v1611_v13 = vpop.eup %1610  ;;  %1620 = vlog2.f32 %v646_v53  ;;  %v1037_v53 = vmul.f32 0.00390625, %v3000_v12  ;;  %v1038_v12 = vmul.f32 0.00390625, %v3018_v52 }
 0x203   : > { %v1228_v7 = vsel %vm1204_vm12, %v1129_v38, 0.0  ;;  %v689_v51 = vmul.f32 0.6931472, %v1611_v13 }
 0x204   : > { %v1263_v5 = vsel %vm1241_vm2, %v1228_v7, 0.0  ;;  %v1130_v28 = vadd.f32 %v1106_v9, %v1082_v48  ;;  %v3025_v57 = vpop.xlane.xlu0 %954  ;;  %v1613_v41 = vpop.eup %1612  ;;  %v1161_v48 = vadd.s32 136, %v2858_v1 }
 0x205   : > { %v649_v6 = vpop.xlane.xlu1 %648  ;;  %v1264_v24 = vadd.f32 %v1263_v5, %v1262_v30  ;;  %v1059_v26 = vsub.f32 %v689_v51, %v1035_v31  ;;  %v987_v10 = vmul.f32 %v3288_v55, %v689_v51  ;;  %v691_v30 = vmul.f32 0.6931472, %v1613_v41 }
 0x206   : > { %v1229_v21 = vsel %vm1205_vm13, %v1130_v28, 0.0  ;;  %1622 = vlog2.f32 %v649_v6 }
 0x207   : > { %v1265_v42 = vsel %vm1241_vm2, %v1229_v21, 0.0  ;;  %v1107_v39 = vmul.f32 0.1, %v1059_v26  ;;  %v988_v22 = vmul.f32 %v2948_v56, %v691_v30  ;;  %v1060_v17 = vsub.f32 %v691_v30, %v1036_v58 }
 0x208   : > { %v1266_v33 = vadd.f32 %v1265_v42, %v1264_v24  ;;  %v3028_v19 = vpop.xlane.xlu0 %882  ;;  %v1615_v46 = vpop.eup %1614  ;;  %v1183_v56 = vadd.s32 %v2860_v35, %v1158_v0  ;;  %v1159_v24 = vadd.s32 120, %v2858_v1  ;;  %v1160_v21 = vadd.s32 128, %v2858_v1 }
 0x209   : > { %v652_v27 = vpop.xlane.xlu1 %651  ;;  %v1617_v23 = vpop.eup %1616  ;;  %v693_v3 = vmul.f32 0.6931472, %v1615_v46  ;;  %v1108_v51 = vmul.f32 0.1, %v1060_v17 }
 0x20a   : > { %v1619_v62 = vpop.eup %1618  ;;  %v695_v61 = vmul.f32 0.6931472, %v1617_v23  ;;  %1624 = vlog2.f32 %v652_v27  ;;  %v3062_v27 = vadd.s32 %v2860_v35, %v1161_v48  ;;  %vm1207_vm15 = vcmp.lt.s32.totalorder %v1183_v56, 200 }
 0x20b   : > { %v3048_v54 = vmul.f32 0.6931472, %v1619_v62  ;;  %v989_v38 = vmul.f32 %v2987_v32, %v693_v3  ;;  %v1061_v6 = vsub.f32 %v693_v3, %v1037_v53  ;;  %v1162_v23 = vadd.s32 144, %v2858_v1 }
 0x20c   : > { %v3036_v36 = vpop.xlane.xlu0 %768  ;;  %v990_v5 = vmul.f32 %v3013_v63, %v695_v61  ;;  %v1621_v28 = vpop.eup %1620  ;;  %v1062_v15 = vsub.f32 %v695_v61, %v1038_v12  ;;  %vm1210_vm0 = vcmp.lt.s32.totalorder %v3062_v27, 200 }
 0x20d   : > { %v871_v18 = vpop.xlane.xlu1 %870  ;;  %v991_v42 = vmul.f32 %v763_v11, %v3048_v54  ;;  %v699_v26 = vmul.f32 0.6931472, %v1621_v28  ;;  %v1109_v25 = vmul.f32 0.1, %v1061_v6  ;;  %v1187_v48 = vadd.s32 %v2860_v35, %v1162_v23 }
 0x20e   : > { %v1011_v20 = vsub.f32 %v987_v10, %v871_v18  ;;  %v1184_v10 = vadd.s32 %v2860_v35, %v1159_v24  ;;  %v1185_v18 = vadd.s32 %v2860_v35, %v1160_v21  ;;  %v1110_v30 = vmul.f32 0.1, %v1062_v15 }
 0x20f   : > { %v1015_v52 = vsub.f32 %v991_v42, %v3028_v19  ;;  %vm1211_vm4 = vcmp.lt.s32.totalorder %v1187_v48, 200 }
 0x210   : > { %v1083_v14 = vmul.f32 0.9, %v1011_v20  ;;  %v3041_v16 = vpop.xlane.xlu0 %960  ;;  %v1623_v32 = vpop.eup %1622  ;;  %vm1208_vm1 = vcmp.lt.s32.totalorder %v1184_v10, 200  ;;  %vm1209_vm3 = vcmp.lt.s32.totalorder %v1185_v18, 200 }
 0x211   : > { %v655_v50 = vpop.xlane.xlu1 %654  ;;  %v701_v55 = vmul.f32 0.6931472, %v1623_v32  ;;  %v1087_v3 = vmul.f32 0.9, %v1015_v52 }
 0x212   : > { %v1131_v59 = vadd.f32 %v1107_v39, %v1083_v14  ;;  %1626 = vlog2.f32 %v655_v50 }
 0x214   : > { %v1230_v40 = vsel %vm1206_vm14, %v1131_v59, 0.0  ;;  %v3043_v2 = vpop.xlane.xlu0 %888  ;;  %v1625_v50 = vpop.eup %1624  ;;  %v1039_v59 = vmul.f32 0.00390625, %v3025_v57 }
 0x215   : > { %v1267_v47 = vsel %vm1241_vm2, %v1230_v40, 0.0  ;;  %v874_v29 = vpop.xlane.xlu1 %873  ;;  %v1163_v40 = vadd.s32 152, %v2858_v1 }
 0x216   : > { %v3030_v49 = vadd.f32 %v1267_v47, %v1266_v33  ;;  %v1012_v4 = vsub.f32 %v988_v22, %v874_v29  ;;  %v1063_v19 = vsub.f32 %v3048_v54, %v1039_v59 }
 0x217   : > { %v1188_v42 = vadd.s32 %v2860_v35, %v1163_v40  ;;  %v1166_v40 = vadd.s32 176, %v2858_v1 }
 0x218   : > { %v3054_v7 = vpop.xlane.xlu0 %774  ;;  %v1084_v13 = vmul.f32 0.9, %v1012_v4  ;;  %v1111_v54 = vmul.f32 0.1, %v1063_v19 }
 0x219   : > { %v3033_v43 = vpop.xlane.xlu1 %657  ;;  %vm1212_vm5 = vcmp.lt.s32.totalorder %v1188_v42, 200 }
 0x21a   : > { %v1132_v63 = vadd.f32 %v1108_v51, %v1084_v13  ;;  %1628 = vlog2.f32 %v3033_v43  ;;  %v1164_v43 = vadd.s32 160, %v2858_v1 }
 0x21c   : > { %v967_v11 = vpop.xlane.xlu0 %966  ;;  %v1627_v29 = vpop.eup %1626 }
 0x21d   : > { %v877_v34 = vpop.xlane.xlu1 %876  ;;  %v705_v62 = vmul.f32 0.6931472, %v1627_v29 }
 0x21e   : > { %v1013_v44 = vsub.f32 %v989_v38, %v877_v34  ;;  %v1231_v34 = vsel %vm1207_vm15, %v1132_v63, 0.0  ;;  %v1041_v38 = vmul.f32 0.00390625, %v3041_v16  ;;  %v1043_v63 = vmul.f32 0.00390625, %v967_v11 }
 0x21f   : > { %v1269_v0 = vsel %vm1241_vm2, %v1231_v34, 0.0  ;;  %v995_v24 = vmul.f32 %v3054_v7, %v705_v62 }
 0x220   : > { %v1085_v31 = vmul.f32 0.9, %v1013_v44  ;;  %v895_v61 = vpop.xlane.xlu0 %894  ;;  %v1135_v44 = vadd.f32 %v1111_v54, %v1087_v3  ;;  %v1270_v28 = vadd.f32 %v1269_v0, %v3030_v49 }
 0x221   : > { %v3039_v60 = vpop.xlane.xlu1 %660 }
 0x222   : > { %v1133_v41 = vadd.f32 %v1109_v25, %v1085_v31  ;;  %1630 = vlog2.f32 %v3039_v60  ;;  %v1234_v49 = vsel %vm1210_vm0, %v1135_v44, 0.0  ;;  %v1189_v31 = vadd.s32 %v2860_v35, %v1164_v43 }
 0x223   : > { %v1275_v27 = vsel %vm1241_vm2, %v1234_v49, 0.0 }
 0x224   : > { %v1232_v4 = vsel %vm1208_vm1, %v1133_v41, 0.0  ;;  %v1629_v18 = vpop.eup %1628  ;;  %vm1213_vm6 = vcmp.lt.s32.totalorder %v1189_v31, 200 }
 0x225   : > { %v880_v45 = vpop.xlane.xlu1 %879  ;;  %v1271_v60 = vsel %vm1241_vm2, %v1232_v4, 0.0  ;;  %v707_v41 = vmul.f32 0.6931472, %v1629_v18 }
 0x226   : > { %v1014_v33 = vsub.f32 %v990_v5, %v880_v45  ;;  %v993_v45 = vmul.f32 %v3036_v36, %v701_v55  ;;  %v1065_v5 = vsub.f32 %v701_v55, %v1041_v38  ;;  %v1272_v51 = vadd.f32 %v1271_v60, %v1270_v28 }
 0x228   : > { %v1086_v20 = vmul.f32 0.9, %v1014_v33  ;;  %v1017_v53 = vsub.f32 %v993_v45, %v3043_v2  ;;  %v781_v33 = vpop.xlane.xlu0 %780  ;;  %v1113_v15 = vmul.f32 0.1, %v1065_v5 }
 0x229   : > { %v766_v8 = vpop.xlane.xlu1 %765 }
 0x22a   : > { %v992_v14 = vmul.f32 %v766_v8, %v699_v26  ;;  %v1134_v57 = vadd.f32 %v1110_v30, %v1086_v20  ;;  %v703_v8 = vmul.f32 0.6931472, %v1625_v50  ;;  %v1089_v32 = vmul.f32 0.9, %v1017_v53 }
 0x22b   : > { %v1067_v20 = vsub.f32 %v705_v62, %v1043_v63 }
 0x22c   : > { %v1233_v56 = vsel %vm1209_vm3, %v1134_v57, 0.0  ;;  %v1137_v52 = vadd.f32 %v1113_v15, %v1089_v32  ;;  %v973_v29 = vpop.xlane.xlu0 %972 }
 0x22d   : > { %v958_v9 = vpop.xlane.xlu1 %957  ;;  %v1273_v12 = vsel %vm1241_vm2, %v1233_v56, 0.0  ;;  %v1115_v19 = vmul.f32 0.1, %v1067_v20  ;;  %v1045_v0 = vmul.f32 0.00390625, %v973_v29 }
 0x22e   : > { %v1040_v39 = vmul.f32 0.00390625, %v958_v9  ;;  %v1274_v55 = vadd.f32 %v1273_v12, %v1272_v51 }
 0x230   : > { %v1064_v22 = vsub.f32 %v699_v26, %v1040_v39  ;;  %v1019_v26 = vsub.f32 %v995_v24, %v895_v61  ;;  %v1631_v39 = vpop.eup %1630  ;;  %v1276_v34 = vadd.f32 %v1275_v27, %v1274_v55  ;;  %v1167_v61 = vadd.s32 184, %v2858_v1 }
 0x231   : > { %v886_v37 = vpop.xlane.xlu1 %885  ;;  %v709_v23 = vmul.f32 0.6931472, %v1631_v39 }
 0x232   : > { %v1016_v46 = vsub.f32 %v992_v14, %v886_v37  ;;  %v1112_v9 = vmul.f32 0.1, %v1064_v22  ;;  %v1165_v14 = vadd.s32 168, %v2858_v1 }
 0x233   : > { %v1069_v54 = vsub.f32 %v709_v23, %v1045_v0 }
 0x234   : > { %v1088_v17 = vmul.f32 0.9, %v1016_v46  ;;  %v1236_v46 = vsel %vm1212_vm5, %v1137_v52, 0.0  ;;  %v1190_v45 = vadd.s32 %v2860_v35, %v1165_v14 }
 0x235   : > { %v772_v47 = vpop.xlane.xlu1 %771  ;;  %v1117_v60 = vmul.f32 0.1, %v1069_v54 }
 0x236   : > { %v994_v13 = vmul.f32 %v772_v47, %v703_v8  ;;  %v1136_v16 = vadd.f32 %v1112_v9, %v1088_v17  ;;  %v1091_v47 = vmul.f32 0.9, %v1019_v26  ;;  %vm1214_vm7 = vcmp.lt.s32.totalorder %v1190_v45, 200 }
 0x237   : > { %v997_v9 = vmul.f32 %v781_v33, %v709_v23 }
 0x238   : > { %v1235_v10 = vsel %vm1211_vm4, %v1136_v16, 0.0  ;;  %v1139_v4 = vadd.f32 %v1115_v19, %v1091_v47 }
 0x239   : > { %v964_v58 = vpop.xlane.xlu1 %963  ;;  %v1277_v59 = vsel %vm1241_vm2, %v1235_v10, 0.0 }
 0x23a   : > { %v1042_v36 = vmul.f32 0.00390625, %v964_v58  ;;  %v1278_v3 = vadd.f32 %v1277_v59, %v1276_v34  ;;  %v1238_v44 = vsel %vm1214_vm7, %v1139_v4, 0.0 }
 0x23b   : > { %v1283_v16 = vsel %vm1241_vm2, %v1238_v44, 0.0 }
 0x23c   : > { %v1066_v21 = vsub.f32 %v703_v8, %v1042_v36  ;;  %v1191_v8 = vadd.s32 %v2860_v35, %v1166_v40  ;;  %v1279_v36 = vsel %vm1241_vm2, %v1236_v46, 0.0 }
 0x23d   : > { %v892_v6 = vpop.xlane.xlu1 %891  ;;  %v1280_v53 = vadd.f32 %v1279_v36, %v1278_v3 }
 0x23e   : > { %v1018_v2 = vsub.f32 %v994_v13, %v892_v6  ;;  %v1114_v25 = vmul.f32 0.1, %v1066_v21  ;;  %vm1215_vm8 = vcmp.lt.s32.totalorder %v1191_v8, 200  ;;  %v1192_v13 = vadd.s32 %v2860_v35, %v1167_v61 }
 0x240   : > { %v1090_v37 = vmul.f32 0.9, %v1018_v2  ;;  %vm1216_vm9 = vcmp.lt.s32.totalorder %v1192_v13, 200 }
 0x241   : > { %v778_v7 = vpop.xlane.xlu1 %777 }
 0x242   : > { %v1138_v50 = vadd.f32 %v1114_v25, %v1090_v37  ;;  %v996_v22 = vmul.f32 %v778_v7, %v707_v41 }
 0x244   : > { %v1237_v57 = vsel %vm1213_vm6, %v1138_v50, 0.0 }
 0x245   : > { %v970_v11 = vpop.xlane.xlu1 %969  ;;  %v1281_v38 = vsel %vm1241_vm2, %v1237_v57, 0.0 }
 0x246   : > { %v1044_v30 = vmul.f32 0.00390625, %v970_v11  ;;  %v1282_v5 = vadd.f32 %v1281_v38, %v1280_v53 }
 0x248   : > { %v1068_v62 = vsub.f32 %v707_v41, %v1044_v30  ;;  %v1284_v32 = vadd.f32 %v1283_v16, %v1282_v5 }
 0x249   : > { %v898_v58 = vpop.xlane.xlu1 %897 }
 0x24a   : > { %v1020_v17 = vsub.f32 %v996_v22, %v898_v58  ;;  %v1116_v48 = vmul.f32 0.1, %v1068_v62 }
 0x24c   : > { %v1092_v56 = vmul.f32 0.9, %v1020_v17 }
 0x24d   : > { %v901_v43 = vpop.xlane.xlu1 %900 }
 0x24e   : > { %v1140_v28 = vadd.f32 %v1116_v48, %v1092_v56  ;;  %v1021_v1 = vsub.f32 %v997_v9, %v901_v43 }
 0x250   : > { %v1239_v6 = vsel %vm1215_vm8, %v1140_v28, 0.0  ;;  %v1093_v24 = vmul.f32 0.9, %v1021_v1 }
 0x251   : > { %v1285_v21 = vsel %vm1241_vm2, %v1239_v6, 0.0 }
 0x252   : > { %v1141_v2 = vadd.f32 %v1117_v60, %v1093_v24  ;;  %v1286_v42 = vadd.f32 %v1285_v21, %v1284_v32 }
 0x254   : > { %v1240_v12 = vsel %vm1216_vm9, %v1141_v2, 0.0 }
 0x255   : > { %v1287_v35 = vsel %vm1241_vm2, %v1240_v12, 0.0 }
 0x256   : > { %v1288_v51 = vadd.f32 %v1287_v35, %v1286_v42 }
 0x258   : > { %1289 = vadd.xlane.f32.xlu0 %v1288_v51 }
 0x2e5   : > { %v1290_v33 = vpop.xlane.xlu0 %1289 }
 0x2e6   : > { %v1291_v37 = vrot.slane %v1290_v33, 4 }
 0x2e8   : > { %v1292_v49 = vadd.f32 %v1291_v37, %v1290_v33 }
 0x2ea   : > { %v1293_v15 = vrot.slane %v1292_v49, 2 }
 0x2ec   : > { %v1294_v63 = vadd.f32 %v1293_v15, %v1292_v49 }
 0x2ee   : > { %v1295_v31 = vrot.slane %v1294_v63, 1 }
 0x2f0   : > { %v1296_v7 = vadd.f32 %v1295_v31, %v1294_v63 }
 0x2f2   : > { %1441 = vpush %v1296_v7 }
 0x323   : > { %s1442_s5 = spop %1441 }
 0x324   : > { %v1298_v26 = vstv %s1442_s5 }
 0x325   : > { %1299 = vst [vmem:[%s217_s25] sm:$0xff] %v1298_v26 }
 0x326   : > { %1701 = shalt.err (!%p1698_p10)
}
 0x327   : > { %s1702_s4 = scalar_lea.hbm %s3110_s14, 128  ;;  %s1706_s28 = scalar_lea.hbm %s3154_s2, 256 }
 0x328   : > { %p1703_p11 = scmp.ne.s32.totalorder %s3110_s14, %s1702_s4  ;;  %p1707_p13 = scmp.lt.u32.totalorder %s3110_s14, %s3154_s2 }
 0x329   : > { %p1708_p12 = scmp.lt.u32.totalorder %s1706_s28, %s1702_s4  ;;  %p1710_p6 = scmp.lt.u32.totalorder %s1702_s4, %s3110_s14 }
 0x32a   : > { %p1704_p2 = pnand %p1703_p11, %p3289_p5 }
 0x32b   : > { %p1709_p0 = por %p1708_p12, %p1707_p13 }
 0x32c   : > { %p1705_p8 = pneg %p1704_p2 }
 0x32d   : > { %p1711_p1 = por %p1710_p6, %p1709_p0 }
 0x32f   : > { %p1712_p3 = pnand %p1711_p1, %p1705_p8 }
 0x331   : > { %1715 = shalt.err (!%p1712_p3)
}
 0x332   : > { %1445 = dma.vmem_to_hbm [thread:$0]  (%p3289_p5), %s3105_s30, 128, %s3110_s14, %s1301_s16  }
 0x333 PF: > { %s1326_s20 = sand.u32 1, %s1746_s9   ;;  %p3290_p4 = scmp.ne.s32.totalorder %s3219_s22, 0 }
 0x334   : > { %p3291_p7 = scmp.ge.s32.totalorder %s1758_s12, 2  ;;  %s1327_s29 = scalar_lea.sflag [#allocation4], %s1326_s20 }
 0x336   : > { %p1448_p9 = pnand %p3291_p7, %p3290_p4 }
 0x338   : > { %1741 = dma.done.wait (!%p1448_p9), %s1327_s29, 128  }
 0x339   : > { %1743 = vsyncadd (!%p1448_p9), %s1327_s29, 4294967168  ;;  %p18_p10 = scmp.ge.s32.totalorder %s1807_s15, 4   ;;  %s3292_s9 = smov %s1750_s10 }
 0x33a   : > { %s3293_s10 = smov %s1754_s11  ;;  %s3294_s11 = smov %s1819_s18 }
 0x33b   : > { %s3295_s12 = smov %s1807_s15  ;;  %20 = sbr.rel (!%p18_p10) target bundleno = 7 (0x7), region = 86 }
 0x342   :  { %1332 = vsyncpa [#allocation3], 1 }
 0x343   :  { %1334 = vsyncpa [#allocation3 + $0x1], 1 }
 0x344   :  { %1335 = vsyncpa [#allocation6], 1 }
 0x345   :  { %1337 = vsyncpa [#allocation6 + $0x1], 1 }
 0x346   :  { %1338 = vsyncpa [#allocation4], 1 }
 0x347   :  { %1340 = vsyncpa [#allocation4 + $0x1], 1 }

</bundles_post_ra>
